<compile_context>
chip_gen: v7x
topology: tpu7x:2x2x1
jax: 0.10.0
libtpu: 0.0.40
codegen_flags: <defaults>
</compile_context>

<pallas_src>
import functools
import math

import jax
import jax.numpy as jnp
from jax.experimental import pallas as pl
from jax.experimental.pallas import tpu as pltpu


def _round_up(x, m):
    return ((x + m - 1) // m) * m


def _largest_divisor_leq(n, cap):
    for c in range(min(n, cap), 0, -1):
        if n % c == 0:
            return c
    return 1


# ----------------------------------------------------------------------------
# Pallas kernel: one (d*k group, bt-batch block) tile per grid step.
# ----------------------------------------------------------------------------
def _puc_kernel(x_ref, w_ref, b_ref, o_ref, xp_ref, col_ref, *,
                kernel_size, stride, pad, L, L_out, L_out_pad, c_in,
                out_channels, seg_bounds, bt, use_mxu):
    # x_ref  : (bt, 1, c_in, L)        unpadded input slab (one d*k group)
    # w_ref  : (1, nlc, o, ks*c_in)    compact per-sparse-group weights (f-major)
    # b_ref  : (1, nlc, o, 1)          compact per-sparse-group bias
    # o_ref  : (bt, 1, o, L_out_pad)   lane-dense output block
    # xp_ref : VMEM (bt, c_in, L_pad)  zero-padded input scratch
    # col_ref: VMEM (ks*c_in, L_out)   im2col scratch
    ks = kernel_size
    ksc = ks * c_in

    # Build the zero-padded input in VMEM (avoids a padded HBM copy of x).
    if pad > 0:
        xp_ref[...] = jnp.zeros_like(xp_ref)
    xp_ref[:, :, pl.ds(pad, L)] = x_ref[:, 0, :, :]

    for bi in range(bt):
        # im2col: row (f*c_in + i), lane p  <-  x_pad[i, p*stride + f]
        for f in range(ks):
            if stride == 1:
                xs = xp_ref[bi, :, pl.ds(f, L_out)]
            else:
                # TODO(synk): for stride>1 decimate once per residue class instead
                # of one strided lane read per tap.
                xs = xp_ref[bi, :, pl.ds(f, L_out, stride)]
            col_ref[f * c_in:(f + 1) * c_in, :] = xs

        segments = []
        for g, (s, e) in enumerate(seg_bounds):
            if e <= s:
                continue
            seg_len = e - s
            wg = w_ref[0, g]                       # (o, ks*c_in)
            xg = col_ref[:, s:e]                   # (ks*c_in, seg_len)
            bg = b_ref[0, g].astype(jnp.float32)   # (o, 1)
            if use_mxu:
                # MXU path: contraction over (i, f) as a single matmul.
                yg = jnp.dot(wg, xg, preferred_element_type=jnp.float32) + bg
            else:
                # Pure-VALU FMA path for small (o, ks*c_in): no XLU reduce,
                # live range bounded to one (o, seg_len) slab.
                acc = jnp.zeros((out_channels, seg_len), jnp.float32)
                for c in range(ksc):
                    acc = acc + wg[:, c:c + 1].astype(jnp.float32) * \
                        xg[c:c + 1, :].astype(jnp.float32)
                yg = acc + bg
            segments.append(yg)

        if L_out_pad > L_out:
            segments.append(jnp.zeros((out_channels, L_out_pad - L_out),
                                      jnp.float32))
        row = segments[0] if len(segments) == 1 else jnp.concatenate(segments,
                                                                     axis=1)
        # Single lane-dense (multiple-of-128) store per batch element.
        o_ref[bi, 0] = row.astype(o_ref.dtype)


# ----------------------------------------------------------------------------
# Wrapper: compact parameter re-layout (tiny, no r-fold expansion) + pallas_call
# ----------------------------------------------------------------------------
def cheap_puc_forward(x, weight, conv_bias_param, *, kernel_size, stride,
                      one_side_pad_length, num_sparse_LC, batch_block=None,
                      force_mxu=None):
    n, d, k, c_in, L = x.shape
    dim_d, dim_k, o, c_in_w, nlc, _one, ks = weight.shape
    assert (dim_d, dim_k, c_in_w, nlc, ks) == (d, k, c_in, num_sparse_LC, kernel_size)

    pad = one_side_pad_length
    L_pad = L + 2 * pad
    L_out = (L_pad - kernel_size) // stride + 1
    L_out_pad = _round_up(L_out, 128)
    dk = d * k

    # Static sparse-group segmentation of output positions (group-major,
    # trailing remainder reuses the last group — matches the torch repeat/cat).
    r = int(math.floor(L / num_sparse_LC))
    if r <= 0:
        # L < num_sparse_LC: every output position uses the last group.
        seg_bounds = tuple([(0, 0)] * (nlc - 1) + [(0, L_out)])
    else:
        assert nlc * r <= L_out, \
            "cheapPUC requires L_out >= num_sparse_LC * floor(L / num_sparse_LC)"
        seg_bounds = tuple(
            (g * r, (g + 1) * r if g < nlc - 1 else L_out) for g in range(nlc))

    # Compact weights: (d*k, nlc, o, ks*c_in); last axis flattened (f, i) with
    # f-major ordering to match the in-kernel im2col rows.
    w_c = weight[:, :, :, :, :, 0, :]                     # (d,k,o,i,g,f)
    w_c = jnp.transpose(w_c, (0, 1, 4, 2, 5, 3))          # (d,k,g,o,f,i)
    w_c = w_c.reshape(dk, nlc, o, ks * c_in)

    if conv_bias_param is not None:
        b_c = jnp.transpose(conv_bias_param[..., 0], (0, 1, 3, 2))   # (d,k,g,o)
        b_c = b_c.reshape(dk, nlc, o, 1)
    else:
        b_c = jnp.zeros((dk, nlc, o, 1), x.dtype)

    x_r = x.reshape(n, dk, c_in, L)                       # free reshape

    bt = batch_block if batch_block is not None else _largest_divisor_leq(n, 8)
    assert n % bt == 0

    # MXU only pays off when the contraction / output dims can fill it.
    use_mxu = (min(o, ks * c_in) >= 64) if force_mxu is None else force_mxu

    kernel = functools.partial(
        _puc_kernel, kernel_size=kernel_size, stride=stride, pad=pad, L=L,
        L_out=L_out, L_out_pad=L_out_pad, c_in=c_in, out_channels=o,
        seg_bounds=seg_bounds, bt=bt, use_mxu=use_mxu)

    itemsize = jnp.dtype(x.dtype).itemsize
    cost = pl.CostEstimate(
        flops=2 * n * dk * o * c_in * ks * L_out,
        transcendentals=0,
        bytes_accessed=(x_r.size * itemsize
                        + w_c.size * jnp.dtype(w_c.dtype).itemsize
                        + b_c.size * jnp.dtype(b_c.dtype).itemsize
                        + n * dk * o * L_out_pad * itemsize))

    # Grid: d*k outer ("parallel" -> megacore shardable), batch blocks inner so
    # weight/bias block indices repeat across the batch and are not re-DMA'd.
    out = pl.pallas_call(
        kernel,
        out_shape=jax.ShapeDtypeStruct((n, dk, o, L_out_pad), x.dtype),
        grid=(dk, n // bt),
        in_specs=[
            pl.BlockSpec((bt, 1, c_in, L), lambda g, b: (b, g, 0, 0)),
            pl.BlockSpec((1, nlc, o, ks * c_in), lambda g, b: (g, 0, 0, 0)),
            pl.BlockSpec((1, nlc, o, 1), lambda g, b: (g, 0, 0, 0)),
        ],
        out_specs=pl.BlockSpec((bt, 1, o, L_out_pad), lambda g, b: (b, g, 0, 0)),
        scratch_shapes=[
            pltpu.VMEM((bt, c_in, L_pad), x.dtype),
            pltpu.VMEM((ks * c_in, L_out), x.dtype),
        ],
        compiler_params=pltpu.CompilerParams(
            dimension_semantics=("parallel", "arbitrary")),
        cost_estimate=cost,
    )(x_r, w_c, b_c)

    # TODO(synk): for very long sequences, add an L_out grid axis (512-1024
    # lane tiles) to bound VMEM on v7x (64 MiB).
    return out[..., :L_out].reshape(n, d, k, o, L_out)


# ----------------------------------------------------------------------------
# Pure-JAX reference (mirrors the torch forward) for verification.
# ----------------------------------------------------------------------------
def _reference(x, weight, conv_bias_param, *, kernel_size, stride,
               one_side_pad_length, num_sparse_LC):
    n, d, k, c_in, L = x.shape
    pad = one_side_pad_length
    x_pad = jnp.pad(x, ((0, 0),) * 4 + ((pad, pad),))
    L_pad = L + 2 * pad
    L_out = (L_pad - kernel_size) // stride + 1
    x_unf = jnp.stack(
        [x_pad[..., f:f + (L_out - 1) * stride + 1:stride]
         for f in range(kernel_size)], axis=-1)                       # b,d,k,i,L_out,ks
    r = int(math.floor(L / num_sparse_LC))
    if r <= 0:
        groups = jnp.full((L_out,), num_sparse_LC - 1, jnp.int32)
    else:
        groups = jnp.minimum(jnp.arange(L_out) // r, num_sparse_LC - 1)
    w_exp = weight[:, :, :, :, :, 0, :][:, :, :, :, groups, :]        # d,k,o,i,L_out,ks
    out = jnp.einsum('dkoilf,bdkilf->bdkol', w_exp, x_unf)
    if conv_bias_param is not None:
        out = out + conv_bias_param[:, :, :, :, 0][:, :, :, groups]
    return out


if __name__ == "__main__":
    # Small shapes consistent with the module's forward signature.
    n, dim_d, dim_k = 2, 2, 2
    in_channels, out_channels = 3, 4
    L = 16                       # spatial length (last dim of x)
    kernel_size, stride = 3, 1
    one_side_pad_length = 2
    num_sparse_LC = 4            # -> r=4, L_out=18, remainder=2 (exercises tail)
    conv_bias = True

    key = jax.random.PRNGKey(0)
    kx, kw, kb = jax.random.split(key, 3)

    x = jax.random.normal(
        kx, (n, dim_d, dim_k, in_channels, L), dtype=jnp.float32)

    # Deterministic "kaiming_normal_(fan_out, relu)"-style init (synthetic).
    w_shape = (dim_d, dim_k, out_channels, in_channels, num_sparse_LC, 1, kernel_size)
    fan_out = w_shape[0] * int(jnp.prod(jnp.array(w_shape[2:])))
    std = math.sqrt(2.0 / fan_out)
    weight = std * jax.random.normal(kw, w_shape, dtype=jnp.float32)

    bias = (0.02 * jax.random.normal(
        kb, (dim_d, dim_k, out_channels, num_sparse_LC, 1), dtype=jnp.float32)
        if conv_bias else None)

    out = cheap_puc_forward(
        x, weight, bias,
        kernel_size=kernel_size, stride=stride,
        one_side_pad_length=one_side_pad_length, num_sparse_LC=num_sparse_LC)
    out = jax.block_until_ready(out)

    ref = _reference(
        x, weight, bias,
        kernel_size=kernel_size, stride=stride,
        one_side_pad_length=one_side_pad_length, num_sparse_LC=num_sparse_LC)

    assert out.shape == (n, dim_d, dim_k, out_channels, 18), out.shape
    err = float(jnp.abs(out - ref).max())
    assert jnp.allclose(out, ref, atol=1e-4, rtol=1e-4), err
    print("KERNEL_OK")
</pallas_src>

<mosaic_0001>
module attributes {stable_mosaic.version = 11 : i64} {
  func.func @_puc_kernel(%arg0: i32, %arg1: i32, %arg2: memref<2x1x3x16xf32, #tpu.memory_space<vmem>>, %arg3: memref<1x4x4x9xf32, #tpu.memory_space<vmem>>, %arg4: memref<1x4x4x1xf32, #tpu.memory_space<vmem>>, %arg5: memref<2x1x4x128xf32, #tpu.memory_space<vmem>>, %arg6: memref<2x3x20xf32, #tpu.memory_space<vmem>>, %arg7: memref<9x18xf32, #tpu.memory_space<vmem>>) attributes {dimension_semantics = [#tpu.dimension_semantics<parallel>, #tpu.dimension_semantics<arbitrary>], iteration_bounds = array<i64: 4, 1>, scalar_prefetch = 0 : i64, scratch_operands = 2 : i64, tpu.core_type = #tpu.core_type<tc>, window_params = [{transform_indices = @transform_0, window_bounds = array<i64: 2, 1, 3, 16>}, {transform_indices = @transform_1, window_bounds = array<i64: 1, 4, 4, 9>}, {transform_indices = @transform_2, window_bounds = array<i64: 1, 4, 4, 1>}, {transform_indices = @transform_3, window_bounds = array<i64: 2, 1, 4, 128>}]} {
    %cst = arith.constant 0.000000e+00 : f32
    %0 = vector.broadcast %cst : f32 to vector<2x3x20xf32>
    %c0 = arith.constant 0 : index
    %c0_0 = arith.constant 0 : index
    %c0_1 = arith.constant 0 : index
    %1 = vector.load %arg6[%c0, %c0_0, %c0_1] : memref<2x3x20xf32, #tpu.memory_space<vmem>>, vector<2x3x20xf32>
    tpu.vector_store %arg6[%c0, %c0_0, %c0_1], %0 {strides = array<i32>} : memref<2x3x20xf32, #tpu.memory_space<vmem>>, vector<2x3x20xf32>,
    %c0_2 = arith.constant 0 : index
    %c0_3 = arith.constant 0 : index
    %c0_4 = arith.constant 0 : index
    %c0_5 = arith.constant 0 : index
    %2 = vector.load %arg2[%c0_2, %c0_3, %c0_4, %c0_5] : memref<2x1x3x16xf32, #tpu.memory_space<vmem>>, vector<2x1x3x16xf32>
    %3 = vector.shape_cast %2 : vector<2x1x3x16xf32> to vector<2x3x16xf32>
    %c0_6 = arith.constant 0 : index
    %c0_7 = arith.constant 0 : index
    %c2 = arith.constant 2 : index
    %4 = vector.load %arg6[%c0_6, %c0_7, %c2] : memref<2x3x20xf32, #tpu.memory_space<vmem>>, vector<2x3x16xf32>
    tpu.vector_store %arg6[%c0_6, %c0_7, %c2], %3 {strides = array<i32>} : memref<2x3x20xf32, #tpu.memory_space<vmem>>, vector<2x3x16xf32>,
    %c0_8 = arith.constant 0 : index
    %c0_9 = arith.constant 0 : index
    %c0_10 = arith.constant 0 : index
    %5 = vector.load %arg6[%c0_8, %c0_9, %c0_10] : memref<2x3x20xf32, #tpu.memory_space<vmem>>, vector<1x3x18xf32>
    %6 = vector.shape_cast %5 : vector<1x3x18xf32> to vector<3x18xf32>
    %c0_11 = arith.constant 0 : index
    %c0_12 = arith.constant 0 : index
    %7 = vector.load %arg7[%c0_11, %c0_12] : memref<9x18xf32, #tpu.memory_space<vmem>>, vector<3x18xf32>
    tpu.vector_store %arg7[%c0_11, %c0_12], %6 {strides = array<i32>} : memref<9x18xf32, #tpu.memory_space<vmem>>, vector<3x18xf32>,
    %c0_13 = arith.constant 0 : index
    %c0_14 = arith.constant 0 : index
    %c1 = arith.constant 1 : index
    %8 = vector.load %arg6[%c0_13, %c0_14, %c1] : memref<2x3x20xf32, #tpu.memory_space<vmem>>, vector<1x3x18xf32>
    %9 = vector.shape_cast %8 : vector<1x3x18xf32> to vector<3x18xf32>
    %c3 = arith.constant 3 : index
    %c0_15 = arith.constant 0 : index
    %10 = vector.load %arg7[%c3, %c0_15] : memref<9x18xf32, #tpu.memory_space<vmem>>, vector<3x18xf32>
    tpu.vector_store %arg7[%c3, %c0_15], %9 {strides = array<i32>} : memref<9x18xf32, #tpu.memory_space<vmem>>, vector<3x18xf32>,
    %c0_16 = arith.constant 0 : index
    %c0_17 = arith.constant 0 : index
    %c2_18 = arith.constant 2 : index
    %11 = vector.load %arg6[%c0_16, %c0_17, %c2_18] : memref<2x3x20xf32, #tpu.memory_space<vmem>>, vector<1x3x18xf32>
    %12 = vector.shape_cast %11 : vector<1x3x18xf32> to vector<3x18xf32>
    %c6 = arith.constant 6 : index
    %c0_19 = arith.constant 0 : index
    %13 = vector.load %arg7[%c6, %c0_19] : memref<9x18xf32, #tpu.memory_space<vmem>>, vector<3x18xf32>
    tpu.vector_store %arg7[%c6, %c0_19], %12 {strides = array<i32>} : memref<9x18xf32, #tpu.memory_space<vmem>>, vector<3x18xf32>,
    %c0_20 = arith.constant 0 : index
    %c0_21 = arith.constant 0 : index
    %c0_22 = arith.constant 0 : index
    %c0_23 = arith.constant 0 : index
    %14 = vector.load %arg3[%c0_20, %c0_21, %c0_22, %c0_23] : memref<1x4x4x9xf32, #tpu.memory_space<vmem>>, vector<1x1x4x9xf32>
    %15 = vector.shape_cast %14 : vector<1x1x4x9xf32> to vector<4x9xf32>
    %c0_24 = arith.constant 0 : index
    %c0_25 = arith.constant 0 : index
    %16 = vector.load %arg7[%c0_24, %c0_25] : memref<9x18xf32, #tpu.memory_space<vmem>>, vector<9x4xf32>
    %c0_26 = arith.constant 0 : index
    %c0_27 = arith.constant 0 : index
    %c0_28 = arith.constant 0 : index
    %c0_29 = arith.constant 0 : index
    %17 = vector.load %arg4[%c0_26, %c0_27, %c0_28, %c0_29] : memref<1x4x4x1xf32, #tpu.memory_space<vmem>>, vector<1x1x4x1xf32>
    %18 = vector.shape_cast %17 : vector<1x1x4x1xf32> to vector<4x1xf32>
    %cst_30 = arith.constant 0.000000e+00 : f32
    %19 = vector.broadcast %cst_30 : f32 to vector<4x4xf32>
    %20 = vector.extract_strided_slice %15 {offsets = [0, 0], sizes = [4, 1], strides = [1, 1]} : vector<4x9xf32> to vector<4x1xf32>
    %21 = vector.extract_strided_slice %16 {offsets = [0, 0], sizes = [1, 4], strides = [1, 1]} : vector<9x4xf32> to vector<1x4xf32>
    %22 = vector.broadcast %20 : vector<4x1xf32> to vector<4x4xf32>
    %23 = vector.broadcast %21 : vector<1x4xf32> to vector<4x4xf32>
    %24 = arith.mulf %22, %23 : vector<4x4xf32>
    %25 = arith.addf %19, %24 : vector<4x4xf32>
    %26 = vector.extract_strided_slice %15 {offsets = [0, 1], sizes = [4, 1], strides = [1, 1]} : vector<4x9xf32> to vector<4x1xf32>
    %27 = vector.extract_strided_slice %16 {offsets = [1, 0], sizes = [1, 4], strides = [1, 1]} : vector<9x4xf32> to vector<1x4xf32>
    %28 = vector.broadcast %26 : vector<4x1xf32> to vector<4x4xf32>
    %29 = vector.broadcast %27 : vector<1x4xf32> to vector<4x4xf32>
    %30 = arith.mulf %28, %29 : vector<4x4xf32>
    %31 = arith.addf %25, %30 : vector<4x4xf32>
    %32 = vector.extract_strided_slice %15 {offsets = [0, 2], sizes = [4, 1], strides = [1, 1]} : vector<4x9xf32> to vector<4x1xf32>
    %33 = vector.extract_strided_slice %16 {offsets = [2, 0], sizes = [1, 4], strides = [1, 1]} : vector<9x4xf32> to vector<1x4xf32>
    %34 = vector.broadcast %32 : vector<4x1xf32> to vector<4x4xf32>
    %35 = vector.broadcast %33 : vector<1x4xf32> to vector<4x4xf32>
    %36 = arith.mulf %34, %35 : vector<4x4xf32>
    %37 = arith.addf %31, %36 : vector<4x4xf32>
    %38 = vector.extract_strided_slice %15 {offsets = [0, 3], sizes = [4, 1], strides = [1, 1]} : vector<4x9xf32> to vector<4x1xf32>
    %39 = vector.extract_strided_slice %16 {offsets = [3, 0], sizes = [1, 4], strides = [1, 1]} : vector<9x4xf32> to vector<1x4xf32>
    %40 = vector.broadcast %38 : vector<4x1xf32> to vector<4x4xf32>
    %41 = vector.broadcast %39 : vector<1x4xf32> to vector<4x4xf32>
    %42 = arith.mulf %40, %41 : vector<4x4xf32>
    %43 = arith.addf %37, %42 : vector<4x4xf32>
    %44 = vector.extract_strided_slice %15 {offsets = [0, 4], sizes = [4, 1], strides = [1, 1]} : vector<4x9xf32> to vector<4x1xf32>
    %45 = vector.extract_strided_slice %16 {offsets = [4, 0], sizes = [1, 4], strides = [1, 1]} : vector<9x4xf32> to vector<1x4xf32>
    %46 = vector.broadcast %44 : vector<4x1xf32> to vector<4x4xf32>
    %47 = vector.broadcast %45 : vector<1x4xf32> to vector<4x4xf32>
    %48 = arith.mulf %46, %47 : vector<4x4xf32>
    %49 = arith.addf %43, %48 : vector<4x4xf32>
    %50 = vector.extract_strided_slice %15 {offsets = [0, 5], sizes = [4, 1], strides = [1, 1]} : vector<4x9xf32> to vector<4x1xf32>
    %51 = vector.extract_strided_slice %16 {offsets = [5, 0], sizes = [1, 4], strides = [1, 1]} : vector<9x4xf32> to vector<1x4xf32>
    %52 = vector.broadcast %50 : vector<4x1xf32> to vector<4x4xf32>
    %53 = vector.broadcast %51 : vector<1x4xf32> to vector<4x4xf32>
    %54 = arith.mulf %52, %53 : vector<4x4xf32>
    %55 = arith.addf %49, %54 : vector<4x4xf32>
    %56 = vector.extract_strided_slice %15 {offsets = [0, 6], sizes = [4, 1], strides = [1, 1]} : vector<4x9xf32> to vector<4x1xf32>
    %57 = vector.extract_strided_slice %16 {offsets = [6, 0], sizes = [1, 4], strides = [1, 1]} : vector<9x4xf32> to vector<1x4xf32>
    %58 = vector.broadcast %56 : vector<4x1xf32> to vector<4x4xf32>
    %59 = vector.broadcast %57 : vector<1x4xf32> to vector<4x4xf32>
    %60 = arith.mulf %58, %59 : vector<4x4xf32>
    %61 = arith.addf %55, %60 : vector<4x4xf32>
    %62 = vector.extract_strided_slice %15 {offsets = [0, 7], sizes = [4, 1], strides = [1, 1]} : vector<4x9xf32> to vector<4x1xf32>
    %63 = vector.extract_strided_slice %16 {offsets = [7, 0], sizes = [1, 4], strides = [1, 1]} : vector<9x4xf32> to vector<1x4xf32>
    %64 = vector.broadcast %62 : vector<4x1xf32> to vector<4x4xf32>
    %65 = vector.broadcast %63 : vector<1x4xf32> to vector<4x4xf32>
    %66 = arith.mulf %64, %65 : vector<4x4xf32>
    %67 = arith.addf %61, %66 : vector<4x4xf32>
    %68 = vector.extract_strided_slice %15 {offsets = [0, 8], sizes = [4, 1], strides = [1, 1]} : vector<4x9xf32> to vector<4x1xf32>
    %69 = vector.extract_strided_slice %16 {offsets = [8, 0], sizes = [1, 4], strides = [1, 1]} : vector<9x4xf32> to vector<1x4xf32>
    %70 = vector.broadcast %68 : vector<4x1xf32> to vector<4x4xf32>
    %71 = vector.broadcast %69 : vector<1x4xf32> to vector<4x4xf32>
    %72 = arith.mulf %70, %71 : vector<4x4xf32>
    %73 = arith.addf %67, %72 : vector<4x4xf32>
    %74 = vector.broadcast %18 : vector<4x1xf32> to vector<4x4xf32>
    %75 = arith.addf %73, %74 : vector<4x4xf32>
    %c0_31 = arith.constant 0 : index
    %c1_32 = arith.constant 1 : index
    %c0_33 = arith.constant 0 : index
    %c0_34 = arith.constant 0 : index
    %76 = vector.load %arg3[%c0_31, %c1_32, %c0_33, %c0_34] : memref<1x4x4x9xf32, #tpu.memory_space<vmem>>, vector<1x1x4x9xf32>
    %77 = vector.shape_cast %76 : vector<1x1x4x9xf32> to vector<4x9xf32>
    %c0_35 = arith.constant 0 : index
    %c4 = arith.constant 4 : index
    %78 = vector.load %arg7[%c0_35, %c4] : memref<9x18xf32, #tpu.memory_space<vmem>>, vector<9x4xf32>
    %c0_36 = arith.constant 0 : index
    %c1_37 = arith.constant 1 : index
    %c0_38 = arith.constant 0 : index
    %c0_39 = arith.constant 0 : index
    %79 = vector.load %arg4[%c0_36, %c1_37, %c0_38, %c0_39] : memref<1x4x4x1xf32, #tpu.memory_space<vmem>>, vector<1x1x4x1xf32>
    %80 = vector.shape_cast %79 : vector<1x1x4x1xf32> to vector<4x1xf32>
    %cst_40 = arith.constant 0.000000e+00 : f32
    %81 = vector.broadcast %cst_40 : f32 to vector<4x4xf32>
    %82 = vector.extract_strided_slice %77 {offsets = [0, 0], sizes = [4, 1], strides = [1, 1]} : vector<4x9xf32> to vector<4x1xf32>
    %83 = vector.extract_strided_slice %78 {offsets = [0, 0], sizes = [1, 4], strides = [1, 1]} : vector<9x4xf32> to vector<1x4xf32>
    %84 = vector.broadcast %82 : vector<4x1xf32> to vector<4x4xf32>
    %85 = vector.broadcast %83 : vector<1x4xf32> to vector<4x4xf32>
    %86 = arith.mulf %84, %85 : vector<4x4xf32>
    %87 = arith.addf %81, %86 : vector<4x4xf32>
    %88 = vector.extract_strided_slice %77 {offsets = [0, 1], sizes = [4, 1], strides = [1, 1]} : vector<4x9xf32> to vector<4x1xf32>
    %89 = vector.extract_strided_slice %78 {offsets = [1, 0], sizes = [1, 4], strides = [1, 1]} : vector<9x4xf32> to vector<1x4xf32>
    %90 = vector.broadcast %88 : vector<4x1xf32> to vector<4x4xf32>
    %91 = vector.broadcast %89 : vector<1x4xf32> to vector<4x4xf32>
    %92 = arith.mulf %90, %91 : vector<4x4xf32>
    %93 = arith.addf %87, %92 : vector<4x4xf32>
    %94 = vector.extract_strided_slice %77 {offsets = [0, 2], sizes = [4, 1], strides = [1, 1]} : vector<4x9xf32> to vector<4x1xf32>
    %95 = vector.extract_strided_slice %78 {offsets = [2, 0], sizes = [1, 4], strides = [1, 1]} : vector<9x4xf32> to vector<1x4xf32>
    %96 = vector.broadcast %94 : vector<4x1xf32> to vector<4x4xf32>
    %97 = vector.broadcast %95 : vector<1x4xf32> to vector<4x4xf32>
    %98 = arith.mulf %96, %97 : vector<4x4xf32>
    %99 = arith.addf %93, %98 : vector<4x4xf32>
    %100 = vector.extract_strided_slice %77 {offsets = [0, 3], sizes = [4, 1], strides = [1, 1]} : vector<4x9xf32> to vector<4x1xf32>
    %101 = vector.extract_strided_slice %78 {offsets = [3, 0], sizes = [1, 4], strides = [1, 1]} : vector<9x4xf32> to vector<1x4xf32>
    %102 = vector.broadcast %100 : vector<4x1xf32> to vector<4x4xf32>
    %103 = vector.broadcast %101 : vector<1x4xf32> to vector<4x4xf32>
    %104 = arith.mulf %102, %103 : vector<4x4xf32>
    %105 = arith.addf %99, %104 : vector<4x4xf32>
    %106 = vector.extract_strided_slice %77 {offsets = [0, 4], sizes = [4, 1], strides = [1, 1]} : vector<4x9xf32> to vector<4x1xf32>
    %107 = vector.extract_strided_slice %78 {offsets = [4, 0], sizes = [1, 4], strides = [1, 1]} : vector<9x4xf32> to vector<1x4xf32>
    %108 = vector.broadcast %106 : vector<4x1xf32> to vector<4x4xf32>
    %109 = vector.broadcast %107 : vector<1x4xf32> to vector<4x4xf32>
    %110 = arith.mulf %108, %109 : vector<4x4xf32>
    %111 = arith.addf %105, %110 : vector<4x4xf32>
    %112 = vector.extract_strided_slice %77 {offsets = [0, 5], sizes = [4, 1], strides = [1, 1]} : vector<4x9xf32> to vector<4x1xf32>
    %113 = vector.extract_strided_slice %78 {offsets = [5, 0], sizes = [1, 4], strides = [1, 1]} : vector<9x4xf32> to vector<1x4xf32>
    %114 = vector.broadcast %112 : vector<4x1xf32> to vector<4x4xf32>
    %115 = vector.broadcast %113 : vector<1x4xf32> to vector<4x4xf32>
    %116 = arith.mulf %114, %115 : vector<4x4xf32>
    %117 = arith.addf %111, %116 : vector<4x4xf32>
    %118 = vector.extract_strided_slice %77 {offsets = [0, 6], sizes = [4, 1], strides = [1, 1]} : vector<4x9xf32> to vector<4x1xf32>
    %119 = vector.extract_strided_slice %78 {offsets = [6, 0], sizes = [1, 4], strides = [1, 1]} : vector<9x4xf32> to vector<1x4xf32>
    %120 = vector.broadcast %118 : vector<4x1xf32> to vector<4x4xf32>
    %121 = vector.broadcast %119 : vector<1x4xf32> to vector<4x4xf32>
    %122 = arith.mulf %120, %121 : vector<4x4xf32>
    %123 = arith.addf %117, %122 : vector<4x4xf32>
    %124 = vector.extract_strided_slice %77 {offsets = [0, 7], sizes = [4, 1], strides = [1, 1]} : vector<4x9xf32> to vector<4x1xf32>
    %125 = vector.extract_strided_slice %78 {offsets = [7, 0], sizes = [1, 4], strides = [1, 1]} : vector<9x4xf32> to vector<1x4xf32>
    %126 = vector.broadcast %124 : vector<4x1xf32> to vector<4x4xf32>
    %127 = vector.broadcast %125 : vector<1x4xf32> to vector<4x4xf32>
    %128 = arith.mulf %126, %127 : vector<4x4xf32>
    %129 = arith.addf %123, %128 : vector<4x4xf32>
    %130 = vector.extract_strided_slice %77 {offsets = [0, 8], sizes = [4, 1], strides = [1, 1]} : vector<4x9xf32> to vector<4x1xf32>
    %131 = vector.extract_strided_slice %78 {offsets = [8, 0], sizes = [1, 4], strides = [1, 1]} : vector<9x4xf32> to vector<1x4xf32>
    %132 = vector.broadcast %130 : vector<4x1xf32> to vector<4x4xf32>
    %133 = vector.broadcast %131 : vector<1x4xf32> to vector<4x4xf32>
    %134 = arith.mulf %132, %133 : vector<4x4xf32>
    %135 = arith.addf %129, %134 : vector<4x4xf32>
    %136 = vector.broadcast %80 : vector<4x1xf32> to vector<4x4xf32>
    %137 = arith.addf %135, %136 : vector<4x4xf32>
    %c0_41 = arith.constant 0 : index
    %c2_42 = arith.constant 2 : index
    %c0_43 = arith.constant 0 : index
    %c0_44 = arith.constant 0 : index
    %138 = vector.load %arg3[%c0_41, %c2_42, %c0_43, %c0_44] : memref<1x4x4x9xf32, #tpu.memory_space<vmem>>, vector<1x1x4x9xf32>
    %139 = vector.shape_cast %138 : vector<1x1x4x9xf32> to vector<4x9xf32>
    %c0_45 = arith.constant 0 : index
    %c8 = arith.constant 8 : index
    %140 = vector.load %arg7[%c0_45, %c8] : memref<9x18xf32, #tpu.memory_space<vmem>>, vector<9x4xf32>
    %c0_46 = arith.constant 0 : index
    %c2_47 = arith.constant 2 : index
    %c0_48 = arith.constant 0 : index
    %c0_49 = arith.constant 0 : index
    %141 = vector.load %arg4[%c0_46, %c2_47, %c0_48, %c0_49] : memref<1x4x4x1xf32, #tpu.memory_space<vmem>>, vector<1x1x4x1xf32>
    %142 = vector.shape_cast %141 : vector<1x1x4x1xf32> to vector<4x1xf32>
    %cst_50 = arith.constant 0.000000e+00 : f32
    %143 = vector.broadcast %cst_50 : f32 to vector<4x4xf32>
    %144 = vector.extract_strided_slice %139 {offsets = [0, 0], sizes = [4, 1], strides = [1, 1]} : vector<4x9xf32> to vector<4x1xf32>
    %145 = vector.extract_strided_slice %140 {offsets = [0, 0], sizes = [1, 4], strides = [1, 1]} : vector<9x4xf32> to vector<1x4xf32>
    %146 = vector.broadcast %144 : vector<4x1xf32> to vector<4x4xf32>
    %147 = vector.broadcast %145 : vector<1x4xf32> to vector<4x4xf32>
    %148 = arith.mulf %146, %147 : vector<4x4xf32>
    %149 = arith.addf %143, %148 : vector<4x4xf32>
    %150 = vector.extract_strided_slice %139 {offsets = [0, 1], sizes = [4, 1], strides = [1, 1]} : vector<4x9xf32> to vector<4x1xf32>
    %151 = vector.extract_strided_slice %140 {offsets = [1, 0], sizes = [1, 4], strides = [1, 1]} : vector<9x4xf32> to vector<1x4xf32>
    %152 = vector.broadcast %150 : vector<4x1xf32> to vector<4x4xf32>
    %153 = vector.broadcast %151 : vector<1x4xf32> to vector<4x4xf32>
    %154 = arith.mulf %152, %153 : vector<4x4xf32>
    %155 = arith.addf %149, %154 : vector<4x4xf32>
    %156 = vector.extract_strided_slice %139 {offsets = [0, 2], sizes = [4, 1], strides = [1, 1]} : vector<4x9xf32> to vector<4x1xf32>
    %157 = vector.extract_strided_slice %140 {offsets = [2, 0], sizes = [1, 4], strides = [1, 1]} : vector<9x4xf32> to vector<1x4xf32>
    %158 = vector.broadcast %156 : vector<4x1xf32> to vector<4x4xf32>
    %159 = vector.broadcast %157 : vector<1x4xf32> to vector<4x4xf32>
    %160 = arith.mulf %158, %159 : vector<4x4xf32>
    %161 = arith.addf %155, %160 : vector<4x4xf32>
    %162 = vector.extract_strided_slice %139 {offsets = [0, 3], sizes = [4, 1], strides = [1, 1]} : vector<4x9xf32> to vector<4x1xf32>
    %163 = vector.extract_strided_slice %140 {offsets = [3, 0], sizes = [1, 4], strides = [1, 1]} : vector<9x4xf32> to vector<1x4xf32>
    %164 = vector.broadcast %162 : vector<4x1xf32> to vector<4x4xf32>
    %165 = vector.broadcast %163 : vector<1x4xf32> to vector<4x4xf32>
    %166 = arith.mulf %164, %165 : vector<4x4xf32>
    %167 = arith.addf %161, %166 : vector<4x4xf32>
    %168 = vector.extract_strided_slice %139 {offsets = [0, 4], sizes = [4, 1], strides = [1, 1]} : vector<4x9xf32> to vector<4x1xf32>
    %169 = vector.extract_strided_slice %140 {offsets = [4, 0], sizes = [1, 4], strides = [1, 1]} : vector<9x4xf32> to vector<1x4xf32>
    %170 = vector.broadcast %168 : vector<4x1xf32> to vector<4x4xf32>
    %171 = vector.broadcast %169 : vector<1x4xf32> to vector<4x4xf32>
    %172 = arith.mulf %170, %171 : vector<4x4xf32>
    %173 = arith.addf %167, %172 : vector<4x4xf32>
    %174 = vector.extract_strided_slice %139 {offsets = [0, 5], sizes = [4, 1], strides = [1, 1]} : vector<4x9xf32> to vector<4x1xf32>
    %175 = vector.extract_strided_slice %140 {offsets = [5, 0], sizes = [1, 4], strides = [1, 1]} : vector<9x4xf32> to vector<1x4xf32>
    %176 = vector.broadcast %174 : vector<4x1xf32> to vector<4x4xf32>
    %177 = vector.broadcast %175 : vector<1x4xf32> to vector<4x4xf32>
    %178 = arith.mulf %176, %177 : vector<4x4xf32>
    %179 = arith.addf %173, %178 : vector<4x4xf32>
    %180 = vector.extract_strided_slice %139 {offsets = [0, 6], sizes = [4, 1], strides = [1, 1]} : vector<4x9xf32> to vector<4x1xf32>
    %181 = vector.extract_strided_slice %140 {offsets = [6, 0], sizes = [1, 4], strides = [1, 1]} : vector<9x4xf32> to vector<1x4xf32>
    %182 = vector.broadcast %180 : vector<4x1xf32> to vector<4x4xf32>
    %183 = vector.broadcast %181 : vector<1x4xf32> to vector<4x4xf32>
    %184 = arith.mulf %182, %183 : vector<4x4xf32>
    %185 = arith.addf %179, %184 : vector<4x4xf32>
    %186 = vector.extract_strided_slice %139 {offsets = [0, 7], sizes = [4, 1], strides = [1, 1]} : vector<4x9xf32> to vector<4x1xf32>
    %187 = vector.extract_strided_slice %140 {offsets = [7, 0], sizes = [1, 4], strides = [1, 1]} : vector<9x4xf32> to vector<1x4xf32>
    %188 = vector.broadcast %186 : vector<4x1xf32> to vector<4x4xf32>
    %189 = vector.broadcast %187 : vector<1x4xf32> to vector<4x4xf32>
    %190 = arith.mulf %188, %189 : vector<4x4xf32>
    %191 = arith.addf %185, %190 : vector<4x4xf32>
    %192 = vector.extract_strided_slice %139 {offsets = [0, 8], sizes = [4, 1], strides = [1, 1]} : vector<4x9xf32> to vector<4x1xf32>
    %193 = vector.extract_strided_slice %140 {offsets = [8, 0], sizes = [1, 4], strides = [1, 1]} : vector<9x4xf32> to vector<1x4xf32>
    %194 = vector.broadcast %192 : vector<4x1xf32> to vector<4x4xf32>
    %195 = vector.broadcast %193 : vector<1x4xf32> to vector<4x4xf32>
    %196 = arith.mulf %194, %195 : vector<4x4xf32>
    %197 = arith.addf %191, %196 : vector<4x4xf32>
    %198 = vector.broadcast %142 : vector<4x1xf32> to vector<4x4xf32>
    %199 = arith.addf %197, %198 : vector<4x4xf32>
    %c0_51 = arith.constant 0 : index
    %c3_52 = arith.constant 3 : index
    %c0_53 = arith.constant 0 : index
    %c0_54 = arith.constant 0 : index
    %200 = vector.load %arg3[%c0_51, %c3_52, %c0_53, %c0_54] : memref<1x4x4x9xf32, #tpu.memory_space<vmem>>, vector<1x1x4x9xf32>
    %201 = vector.shape_cast %200 : vector<1x1x4x9xf32> to vector<4x9xf32>
    %c0_55 = arith.constant 0 : index
    %c12 = arith.constant 12 : index
    %202 = vector.load %arg7[%c0_55, %c12] : memref<9x18xf32, #tpu.memory_space<vmem>>, vector<9x6xf32>
    %c0_56 = arith.constant 0 : index
    %c3_57 = arith.constant 3 : index
    %c0_58 = arith.constant 0 : index
    %c0_59 = arith.constant 0 : index
    %203 = vector.load %arg4[%c0_56, %c3_57, %c0_58, %c0_59] : memref<1x4x4x1xf32, #tpu.memory_space<vmem>>, vector<1x1x4x1xf32>
    %204 = vector.shape_cast %203 : vector<1x1x4x1xf32> to vector<4x1xf32>
    %cst_60 = arith.constant 0.000000e+00 : f32
    %205 = vector.broadcast %cst_60 : f32 to vector<4x6xf32>
    %206 = vector.extract_strided_slice %201 {offsets = [0, 0], sizes = [4, 1], strides = [1, 1]} : vector<4x9xf32> to vector<4x1xf32>
    %207 = vector.extract_strided_slice %202 {offsets = [0, 0], sizes = [1, 6], strides = [1, 1]} : vector<9x6xf32> to vector<1x6xf32>
    %208 = vector.broadcast %206 : vector<4x1xf32> to vector<4x6xf32>
    %209 = vector.broadcast %207 : vector<1x6xf32> to vector<4x6xf32>
    %210 = arith.mulf %208, %209 : vector<4x6xf32>
    %211 = arith.addf %205, %210 : vector<4x6xf32>
    %212 = vector.extract_strided_slice %201 {offsets = [0, 1], sizes = [4, 1], strides = [1, 1]} : vector<4x9xf32> to vector<4x1xf32>
    %213 = vector.extract_strided_slice %202 {offsets = [1, 0], sizes = [1, 6], strides = [1, 1]} : vector<9x6xf32> to vector<1x6xf32>
    %214 = vector.broadcast %212 : vector<4x1xf32> to vector<4x6xf32>
    %215 = vector.broadcast %213 : vector<1x6xf32> to vector<4x6xf32>
    %216 = arith.mulf %214, %215 : vector<4x6xf32>
    %217 = arith.addf %211, %216 : vector<4x6xf32>
    %218 = vector.extract_strided_slice %201 {offsets = [0, 2], sizes = [4, 1], strides = [1, 1]} : vector<4x9xf32> to vector<4x1xf32>
    %219 = vector.extract_strided_slice %202 {offsets = [2, 0], sizes = [1, 6], strides = [1, 1]} : vector<9x6xf32> to vector<1x6xf32>
    %220 = vector.broadcast %218 : vector<4x1xf32> to vector<4x6xf32>
    %221 = vector.broadcast %219 : vector<1x6xf32> to vector<4x6xf32>
    %222 = arith.mulf %220, %221 : vector<4x6xf32>
    %223 = arith.addf %217, %222 : vector<4x6xf32>
    %224 = vector.extract_strided_slice %201 {offsets = [0, 3], sizes = [4, 1], strides = [1, 1]} : vector<4x9xf32> to vector<4x1xf32>
    %225 = vector.extract_strided_slice %202 {offsets = [3, 0], sizes = [1, 6], strides = [1, 1]} : vector<9x6xf32> to vector<1x6xf32>
    %226 = vector.broadcast %224 : vector<4x1xf32> to vector<4x6xf32>
    %227 = vector.broadcast %225 : vector<1x6xf32> to vector<4x6xf32>
    %228 = arith.mulf %226, %227 : vector<4x6xf32>
    %229 = arith.addf %223, %228 : vector<4x6xf32>
    %230 = vector.extract_strided_slice %201 {offsets = [0, 4], sizes = [4, 1], strides = [1, 1]} : vector<4x9xf32> to vector<4x1xf32>
    %231 = vector.extract_strided_slice %202 {offsets = [4, 0], sizes = [1, 6], strides = [1, 1]} : vector<9x6xf32> to vector<1x6xf32>
    %232 = vector.broadcast %230 : vector<4x1xf32> to vector<4x6xf32>
    %233 = vector.broadcast %231 : vector<1x6xf32> to vector<4x6xf32>
    %234 = arith.mulf %232, %233 : vector<4x6xf32>
    %235 = arith.addf %229, %234 : vector<4x6xf32>
    %236 = vector.extract_strided_slice %201 {offsets = [0, 5], sizes = [4, 1], strides = [1, 1]} : vector<4x9xf32> to vector<4x1xf32>
    %237 = vector.extract_strided_slice %202 {offsets = [5, 0], sizes = [1, 6], strides = [1, 1]} : vector<9x6xf32> to vector<1x6xf32>
    %238 = vector.broadcast %236 : vector<4x1xf32> to vector<4x6xf32>
    %239 = vector.broadcast %237 : vector<1x6xf32> to vector<4x6xf32>
    %240 = arith.mulf %238, %239 : vector<4x6xf32>
    %241 = arith.addf %235, %240 : vector<4x6xf32>
    %242 = vector.extract_strided_slice %201 {offsets = [0, 6], sizes = [4, 1], strides = [1, 1]} : vector<4x9xf32> to vector<4x1xf32>
    %243 = vector.extract_strided_slice %202 {offsets = [6, 0], sizes = [1, 6], strides = [1, 1]} : vector<9x6xf32> to vector<1x6xf32>
    %244 = vector.broadcast %242 : vector<4x1xf32> to vector<4x6xf32>
    %245 = vector.broadcast %243 : vector<1x6xf32> to vector<4x6xf32>
    %246 = arith.mulf %244, %245 : vector<4x6xf32>
    %247 = arith.addf %241, %246 : vector<4x6xf32>
    %248 = vector.extract_strided_slice %201 {offsets = [0, 7], sizes = [4, 1], strides = [1, 1]} : vector<4x9xf32> to vector<4x1xf32>
    %249 = vector.extract_strided_slice %202 {offsets = [7, 0], sizes = [1, 6], strides = [1, 1]} : vector<9x6xf32> to vector<1x6xf32>
    %250 = vector.broadcast %248 : vector<4x1xf32> to vector<4x6xf32>
    %251 = vector.broadcast %249 : vector<1x6xf32> to vector<4x6xf32>
    %252 = arith.mulf %250, %251 : vector<4x6xf32>
    %253 = arith.addf %247, %252 : vector<4x6xf32>
    %254 = vector.extract_strided_slice %201 {offsets = [0, 8], sizes = [4, 1], strides = [1, 1]} : vector<4x9xf32> to vector<4x1xf32>
    %255 = vector.extract_strided_slice %202 {offsets = [8, 0], sizes = [1, 6], strides = [1, 1]} : vector<9x6xf32> to vector<1x6xf32>
    %256 = vector.broadcast %254 : vector<4x1xf32> to vector<4x6xf32>
    %257 = vector.broadcast %255 : vector<1x6xf32> to vector<4x6xf32>
    %258 = arith.mulf %256, %257 : vector<4x6xf32>
    %259 = arith.addf %253, %258 : vector<4x6xf32>
    %260 = vector.broadcast %204 : vector<4x1xf32> to vector<4x6xf32>
    %261 = arith.addf %259, %260 : vector<4x6xf32>
    %cst_61 = arith.constant 0.000000e+00 : f32
    %262 = vector.broadcast %cst_61 : f32 to vector<4x110xf32>
    %263 = tpu.concatenate %75, %137, %199, %261, %262 in 1 : vector<4x4xf32>, vector<4x4xf32>, vector<4x4xf32>, vector<4x6xf32>, vector<4x110xf32> -> vector<4x128xf32>
    %c0_62 = arith.constant 0 : index
    %c0_63 = arith.constant 0 : index
    %c0_64 = arith.constant 0 : index
    %c0_65 = arith.constant 0 : index
    %264 = vector.load %arg5[%c0_62, %c0_63, %c0_64, %c0_65] : memref<2x1x4x128xf32, #tpu.memory_space<vmem>>, vector<1x1x4x128xf32>
    %265 = vector.shape_cast %264 : vector<1x1x4x128xf32> to vector<4x128xf32>
    %266 = vector.shape_cast %263 : vector<4x128xf32> to vector<1x1x4x128xf32>
    tpu.vector_store %arg5[%c0_62, %c0_63, %c0_64, %c0_65], %266 {strides = array<i32>} : memref<2x1x4x128xf32, #tpu.memory_space<vmem>>, vector<1x1x4x128xf32>,
    %c1_66 = arith.constant 1 : index
    %c0_67 = arith.constant 0 : index
    %c0_68 = arith.constant 0 : index
    %267 = vector.load %arg6[%c1_66, %c0_67, %c0_68] : memref<2x3x20xf32, #tpu.memory_space<vmem>>, vector<1x3x18xf32>
    %268 = vector.shape_cast %267 : vector<1x3x18xf32> to vector<3x18xf32>
    %c0_69 = arith.constant 0 : index
    %c0_70 = arith.constant 0 : index
    %269 = vector.load %arg7[%c0_69, %c0_70] : memref<9x18xf32, #tpu.memory_space<vmem>>, vector<3x18xf32>
    tpu.vector_store %arg7[%c0_69, %c0_70], %268 {strides = array<i32>} : memref<9x18xf32, #tpu.memory_space<vmem>>, vector<3x18xf32>,
    %c1_71 = arith.constant 1 : index
    %c0_72 = arith.constant 0 : index
    %c1_73 = arith.constant 1 : index
    %270 = vector.load %arg6[%c1_71, %c0_72, %c1_73] : memref<2x3x20xf32, #tpu.memory_space<vmem>>, vector<1x3x18xf32>
    %271 = vector.shape_cast %270 : vector<1x3x18xf32> to vector<3x18xf32>
    %c3_74 = arith.constant 3 : index
    %c0_75 = arith.constant 0 : index
    %272 = vector.load %arg7[%c3_74, %c0_75] : memref<9x18xf32, #tpu.memory_space<vmem>>, vector<3x18xf32>
    tpu.vector_store %arg7[%c3_74, %c0_75], %271 {strides = array<i32>} : memref<9x18xf32, #tpu.memory_space<vmem>>, vector<3x18xf32>,
    %c1_76 = arith.constant 1 : index
    %c0_77 = arith.constant 0 : index
    %c2_78 = arith.constant 2 : index
    %273 = vector.load %arg6[%c1_76, %c0_77, %c2_78] : memref<2x3x20xf32, #tpu.memory_space<vmem>>, vector<1x3x18xf32>
    %274 = vector.shape_cast %273 : vector<1x3x18xf32> to vector<3x18xf32>
    %c6_79 = arith.constant 6 : index
    %c0_80 = arith.constant 0 : index
    %275 = vector.load %arg7[%c6_79, %c0_80] : memref<9x18xf32, #tpu.memory_space<vmem>>, vector<3x18xf32>
    tpu.vector_store %arg7[%c6_79, %c0_80], %274 {strides = array<i32>} : memref<9x18xf32, #tpu.memory_space<vmem>>, vector<3x18xf32>,
    %c0_81 = arith.constant 0 : index
    %c0_82 = arith.constant 0 : index
    %c0_83 = arith.constant 0 : index
    %c0_84 = arith.constant 0 : index
    %276 = vector.load %arg3[%c0_81, %c0_82, %c0_83, %c0_84] : memref<1x4x4x9xf32, #tpu.memory_space<vmem>>, vector<1x1x4x9xf32>
    %277 = vector.shape_cast %276 : vector<1x1x4x9xf32> to vector<4x9xf32>
    %c0_85 = arith.constant 0 : index
    %c0_86 = arith.constant 0 : index
    %278 = vector.load %arg7[%c0_85, %c0_86] : memref<9x18xf32, #tpu.memory_space<vmem>>, vector<9x4xf32>
    %c0_87 = arith.constant 0 : index
    %c0_88 = arith.constant 0 : index
    %c0_89 = arith.constant 0 : index
    %c0_90 = arith.constant 0 : index
    %279 = vector.load %arg4[%c0_87, %c0_88, %c0_89, %c0_90] : memref<1x4x4x1xf32, #tpu.memory_space<vmem>>, vector<1x1x4x1xf32>
    %280 = vector.shape_cast %279 : vector<1x1x4x1xf32> to vector<4x1xf32>
    %cst_91 = arith.constant 0.000000e+00 : f32
    %281 = vector.broadcast %cst_91 : f32 to vector<4x4xf32>
    %282 = vector.extract_strided_slice %277 {offsets = [0, 0], sizes = [4, 1], strides = [1, 1]} : vector<4x9xf32> to vector<4x1xf32>
    %283 = vector.extract_strided_slice %278 {offsets = [0, 0], sizes = [1, 4], strides = [1, 1]} : vector<9x4xf32> to vector<1x4xf32>
    %284 = vector.broadcast %282 : vector<4x1xf32> to vector<4x4xf32>
    %285 = vector.broadcast %283 : vector<1x4xf32> to vector<4x4xf32>
    %286 = arith.mulf %284, %285 : vector<4x4xf32>
    %287 = arith.addf %281, %286 : vector<4x4xf32>
    %288 = vector.extract_strided_slice %277 {offsets = [0, 1], sizes = [4, 1], strides = [1, 1]} : vector<4x9xf32> to vector<4x1xf32>
    %289 = vector.extract_strided_slice %278 {offsets = [1, 0], sizes = [1, 4], strides = [1, 1]} : vector<9x4xf32> to vector<1x4xf32>
    %290 = vector.broadcast %288 : vector<4x1xf32> to vector<4x4xf32>
    %291 = vector.broadcast %289 : vector<1x4xf32> to vector<4x4xf32>
    %292 = arith.mulf %290, %291 : vector<4x4xf32>
    %293 = arith.addf %287, %292 : vector<4x4xf32>
    %294 = vector.extract_strided_slice %277 {offsets = [0, 2], sizes = [4, 1], strides = [1, 1]} : vector<4x9xf32> to vector<4x1xf32>
    %295 = vector.extract_strided_slice %278 {offsets = [2, 0], sizes = [1, 4], strides = [1, 1]} : vector<9x4xf32> to vector<1x4xf32>
    %296 = vector.broadcast %294 : vector<4x1xf32> to vector<4x4xf32>
    %297 = vector.broadcast %295 : vector<1x4xf32> to vector<4x4xf32>
    %298 = arith.mulf %296, %297 : vector<4x4xf32>
    %299 = arith.addf %293, %298 : vector<4x4xf32>
    %300 = vector.extract_strided_slice %277 {offsets = [0, 3], sizes = [4, 1], strides = [1, 1]} : vector<4x9xf32> to vector<4x1xf32>
    %301 = vector.extract_strided_slice %278 {offsets = [3, 0], sizes = [1, 4], strides = [1, 1]} : vector<9x4xf32> to vector<1x4xf32>
    %302 = vector.broadcast %300 : vector<4x1xf32> to vector<4x4xf32>
    %303 = vector.broadcast %301 : vector<1x4xf32> to vector<4x4xf32>
    %304 = arith.mulf %302, %303 : vector<4x4xf32>
    %305 = arith.addf %299, %304 : vector<4x4xf32>
    %306 = vector.extract_strided_slice %277 {offsets = [0, 4], sizes = [4, 1], strides = [1, 1]} : vector<4x9xf32> to vector<4x1xf32>
    %307 = vector.extract_strided_slice %278 {offsets = [4, 0], sizes = [1, 4], strides = [1, 1]} : vector<9x4xf32> to vector<1x4xf32>
    %308 = vector.broadcast %306 : vector<4x1xf32> to vector<4x4xf32>
    %309 = vector.broadcast %307 : vector<1x4xf32> to vector<4x4xf32>
    %310 = arith.mulf %308, %309 : vector<4x4xf32>
    %311 = arith.addf %305, %310 : vector<4x4xf32>
    %312 = vector.extract_strided_slice %277 {offsets = [0, 5], sizes = [4, 1], strides = [1, 1]} : vector<4x9xf32> to vector<4x1xf32>
    %313 = vector.extract_strided_slice %278 {offsets = [5, 0], sizes = [1, 4], strides = [1, 1]} : vector<9x4xf32> to vector<1x4xf32>
    %314 = vector.broadcast %312 : vector<4x1xf32> to vector<4x4xf32>
    %315 = vector.broadcast %313 : vector<1x4xf32> to vector<4x4xf32>
    %316 = arith.mulf %314, %315 : vector<4x4xf32>
    %317 = arith.addf %311, %316 : vector<4x4xf32>
    %318 = vector.extract_strided_slice %277 {offsets = [0, 6], sizes = [4, 1], strides = [1, 1]} : vector<4x9xf32> to vector<4x1xf32>
    %319 = vector.extract_strided_slice %278 {offsets = [6, 0], sizes = [1, 4], strides = [1, 1]} : vector<9x4xf32> to vector<1x4xf32>
    %320 = vector.broadcast %318 : vector<4x1xf32> to vector<4x4xf32>
    %321 = vector.broadcast %319 : vector<1x4xf32> to vector<4x4xf32>
    %322 = arith.mulf %320, %321 : vector<4x4xf32>
    %323 = arith.addf %317, %322 : vector<4x4xf32>
    %324 = vector.extract_strided_slice %277 {offsets = [0, 7], sizes = [4, 1], strides = [1, 1]} : vector<4x9xf32> to vector<4x1xf32>
    %325 = vector.extract_strided_slice %278 {offsets = [7, 0], sizes = [1, 4], strides = [1, 1]} : vector<9x4xf32> to vector<1x4xf32>
    %326 = vector.broadcast %324 : vector<4x1xf32> to vector<4x4xf32>
    %327 = vector.broadcast %325 : vector<1x4xf32> to vector<4x4xf32>
    %328 = arith.mulf %326, %327 : vector<4x4xf32>
    %329 = arith.addf %323, %328 : vector<4x4xf32>
    %330 = vector.extract_strided_slice %277 {offsets = [0, 8], sizes = [4, 1], strides = [1, 1]} : vector<4x9xf32> to vector<4x1xf32>
    %331 = vector.extract_strided_slice %278 {offsets = [8, 0], sizes = [1, 4], strides = [1, 1]} : vector<9x4xf32> to vector<1x4xf32>
    %332 = vector.broadcast %330 : vector<4x1xf32> to vector<4x4xf32>
    %333 = vector.broadcast %331 : vector<1x4xf32> to vector<4x4xf32>
    %334 = arith.mulf %332, %333 : vector<4x4xf32>
    %335 = arith.addf %329, %334 : vector<4x4xf32>
    %336 = vector.broadcast %280 : vector<4x1xf32> to vector<4x4xf32>
    %337 = arith.addf %335, %336 : vector<4x4xf32>
    %c0_92 = arith.constant 0 : index
    %c1_93 = arith.constant 1 : index
    %c0_94 = arith.constant 0 : index
    %c0_95 = arith.constant 0 : index
    %338 = vector.load %arg3[%c0_92, %c1_93, %c0_94, %c0_95] : memref<1x4x4x9xf32, #tpu.memory_space<vmem>>, vector<1x1x4x9xf32>
    %339 = vector.shape_cast %338 : vector<1x1x4x9xf32> to vector<4x9xf32>
    %c0_96 = arith.constant 0 : index
    %c4_97 = arith.constant 4 : index
    %340 = vector.load %arg7[%c0_96, %c4_97] : memref<9x18xf32, #tpu.memory_space<vmem>>, vector<9x4xf32>
    %c0_98 = arith.constant 0 : index
    %c1_99 = arith.constant 1 : index
    %c0_100 = arith.constant 0 : index
    %c0_101 = arith.constant 0 : index
    %341 = vector.load %arg4[%c0_98, %c1_99, %c0_100, %c0_101] : memref<1x4x4x1xf32, #tpu.memory_space<vmem>>, vector<1x1x4x1xf32>
    %342 = vector.shape_cast %341 : vector<1x1x4x1xf32> to vector<4x1xf32>
    %cst_102 = arith.constant 0.000000e+00 : f32
    %343 = vector.broadcast %cst_102 : f32 to vector<4x4xf32>
    %344 = vector.extract_strided_slice %339 {offsets = [0, 0], sizes = [4, 1], strides = [1, 1]} : vector<4x9xf32> to vector<4x1xf32>
    %345 = vector.extract_strided_slice %340 {offsets = [0, 0], sizes = [1, 4], strides = [1, 1]} : vector<9x4xf32> to vector<1x4xf32>
    %346 = vector.broadcast %344 : vector<4x1xf32> to vector<4x4xf32>
    %347 = vector.broadcast %345 : vector<1x4xf32> to vector<4x4xf32>
    %348 = arith.mulf %346, %347 : vector<4x4xf32>
    %349 = arith.addf %343, %348 : vector<4x4xf32>
    %350 = vector.extract_strided_slice %339 {offsets = [0, 1], sizes = [4, 1], strides = [1, 1]} : vector<4x9xf32> to vector<4x1xf32>
    %351 = vector.extract_strided_slice %340 {offsets = [1, 0], sizes = [1, 4], strides = [1, 1]} : vector<9x4xf32> to vector<1x4xf32>
    %352 = vector.broadcast %350 : vector<4x1xf32> to vector<4x4xf32>
    %353 = vector.broadcast %351 : vector<1x4xf32> to vector<4x4xf32>
    %354 = arith.mulf %352, %353 : vector<4x4xf32>
    %355 = arith.addf %349, %354 : vector<4x4xf32>
    %356 = vector.extract_strided_slice %339 {offsets = [0, 2], sizes = [4, 1], strides = [1, 1]} : vector<4x9xf32> to vector<4x1xf32>
    %357 = vector.extract_strided_slice %340 {offsets = [2, 0], sizes = [1, 4], strides = [1, 1]} : vector<9x4xf32> to vector<1x4xf32>
    %358 = vector.broadcast %356 : vector<4x1xf32> to vector<4x4xf32>
    %359 = vector.broadcast %357 : vector<1x4xf32> to vector<4x4xf32>
    %360 = arith.mulf %358, %359 : vector<4x4xf32>
    %361 = arith.addf %355, %360 : vector<4x4xf32>
    %362 = vector.extract_strided_slice %339 {offsets = [0, 3], sizes = [4, 1], strides = [1, 1]} : vector<4x9xf32> to vector<4x1xf32>
    %363 = vector.extract_strided_slice %340 {offsets = [3, 0], sizes = [1, 4], strides = [1, 1]} : vector<9x4xf32> to vector<1x4xf32>
    %364 = vector.broadcast %362 : vector<4x1xf32> to vector<4x4xf32>
    %365 = vector.broadcast %363 : vector<1x4xf32> to vector<4x4xf32>
    %366 = arith.mulf %364, %365 : vector<4x4xf32>
    %367 = arith.addf %361, %366 : vector<4x4xf32>
    %368 = vector.extract_strided_slice %339 {offsets = [0, 4], sizes = [4, 1], strides = [1, 1]} : vector<4x9xf32> to vector<4x1xf32>
    %369 = vector.extract_strided_slice %340 {offsets = [4, 0], sizes = [1, 4], strides = [1, 1]} : vector<9x4xf32> to vector<1x4xf32>
    %370 = vector.broadcast %368 : vector<4x1xf32> to vector<4x4xf32>
    %371 = vector.broadcast %369 : vector<1x4xf32> to vector<4x4xf32>
    %372 = arith.mulf %370, %371 : vector<4x4xf32>
    %373 = arith.addf %367, %372 : vector<4x4xf32>
    %374 = vector.extract_strided_slice %339 {offsets = [0, 5], sizes = [4, 1], strides = [1, 1]} : vector<4x9xf32> to vector<4x1xf32>
    %375 = vector.extract_strided_slice %340 {offsets = [5, 0], sizes = [1, 4], strides = [1, 1]} : vector<9x4xf32> to vector<1x4xf32>
    %376 = vector.broadcast %374 : vector<4x1xf32> to vector<4x4xf32>
    %377 = vector.broadcast %375 : vector<1x4xf32> to vector<4x4xf32>
    %378 = arith.mulf %376, %377 : vector<4x4xf32>
    %379 = arith.addf %373, %378 : vector<4x4xf32>
    %380 = vector.extract_strided_slice %339 {offsets = [0, 6], sizes = [4, 1], strides = [1, 1]} : vector<4x9xf32> to vector<4x1xf32>
    %381 = vector.extract_strided_slice %340 {offsets = [6, 0], sizes = [1, 4], strides = [1, 1]} : vector<9x4xf32> to vector<1x4xf32>
    %382 = vector.broadcast %380 : vector<4x1xf32> to vector<4x4xf32>
    %383 = vector.broadcast %381 : vector<1x4xf32> to vector<4x4xf32>
    %384 = arith.mulf %382, %383 : vector<4x4xf32>
    %385 = arith.addf %379, %384 : vector<4x4xf32>
    %386 = vector.extract_strided_slice %339 {offsets = [0, 7], sizes = [4, 1], strides = [1, 1]} : vector<4x9xf32> to vector<4x1xf32>
    %387 = vector.extract_strided_slice %340 {offsets = [7, 0], sizes = [1, 4], strides = [1, 1]} : vector<9x4xf32> to vector<1x4xf32>
    %388 = vector.broadcast %386 : vector<4x1xf32> to vector<4x4xf32>
    %389 = vector.broadcast %387 : vector<1x4xf32> to vector<4x4xf32>
    %390 = arith.mulf %388, %389 : vector<4x4xf32>
    %391 = arith.addf %385, %390 : vector<4x4xf32>
    %392 = vector.extract_strided_slice %339 {offsets = [0, 8], sizes = [4, 1], strides = [1, 1]} : vector<4x9xf32> to vector<4x1xf32>
    %393 = vector.extract_strided_slice %340 {offsets = [8, 0], sizes = [1, 4], strides = [1, 1]} : vector<9x4xf32> to vector<1x4xf32>
    %394 = vector.broadcast %392 : vector<4x1xf32> to vector<4x4xf32>
    %395 = vector.broadcast %393 : vector<1x4xf32> to vector<4x4xf32>
    %396 = arith.mulf %394, %395 : vector<4x4xf32>
    %397 = arith.addf %391, %396 : vector<4x4xf32>
    %398 = vector.broadcast %342 : vector<4x1xf32> to vector<4x4xf32>
    %399 = arith.addf %397, %398 : vector<4x4xf32>
    %c0_103 = arith.constant 0 : index
    %c2_104 = arith.constant 2 : index
    %c0_105 = arith.constant 0 : index
    %c0_106 = arith.constant 0 : index
    %400 = vector.load %arg3[%c0_103, %c2_104, %c0_105, %c0_106] : memref<1x4x4x9xf32, #tpu.memory_space<vmem>>, vector<1x1x4x9xf32>
    %401 = vector.shape_cast %400 : vector<1x1x4x9xf32> to vector<4x9xf32>
    %c0_107 = arith.constant 0 : index
    %c8_108 = arith.constant 8 : index
    %402 = vector.load %arg7[%c0_107, %c8_108] : memref<9x18xf32, #tpu.memory_space<vmem>>, vector<9x4xf32>
    %c0_109 = arith.constant 0 : index
    %c2_110 = arith.constant 2 : index
    %c0_111 = arith.constant 0 : index
    %c0_112 = arith.constant 0 : index
    %403 = vector.load %arg4[%c0_109, %c2_110, %c0_111, %c0_112] : memref<1x4x4x1xf32, #tpu.memory_space<vmem>>, vector<1x1x4x1xf32>
    %404 = vector.shape_cast %403 : vector<1x1x4x1xf32> to vector<4x1xf32>
    %cst_113 = arith.constant 0.000000e+00 : f32
    %405 = vector.broadcast %cst_113 : f32 to vector<4x4xf32>
    %406 = vector.extract_strided_slice %401 {offsets = [0, 0], sizes = [4, 1], strides = [1, 1]} : vector<4x9xf32> to vector<4x1xf32>
    %407 = vector.extract_strided_slice %402 {offsets = [0, 0], sizes = [1, 4], strides = [1, 1]} : vector<9x4xf32> to vector<1x4xf32>
    %408 = vector.broadcast %406 : vector<4x1xf32> to vector<4x4xf32>
    %409 = vector.broadcast %407 : vector<1x4xf32> to vector<4x4xf32>
    %410 = arith.mulf %408, %409 : vector<4x4xf32>
    %411 = arith.addf %405, %410 : vector<4x4xf32>
    %412 = vector.extract_strided_slice %401 {offsets = [0, 1], sizes = [4, 1], strides = [1, 1]} : vector<4x9xf32> to vector<4x1xf32>
    %413 = vector.extract_strided_slice %402 {offsets = [1, 0], sizes = [1, 4], strides = [1, 1]} : vector<9x4xf32> to vector<1x4xf32>
    %414 = vector.broadcast %412 : vector<4x1xf32> to vector<4x4xf32>
    %415 = vector.broadcast %413 : vector<1x4xf32> to vector<4x4xf32>
    %416 = arith.mulf %414, %415 : vector<4x4xf32>
    %417 = arith.addf %411, %416 : vector<4x4xf32>
    %418 = vector.extract_strided_slice %401 {offsets = [0, 2], sizes = [4, 1], strides = [1, 1]} : vector<4x9xf32> to vector<4x1xf32>
    %419 = vector.extract_strided_slice %402 {offsets = [2, 0], sizes = [1, 4], strides = [1, 1]} : vector<9x4xf32> to vector<1x4xf32>
    %420 = vector.broadcast %418 : vector<4x1xf32> to vector<4x4xf32>
    %421 = vector.broadcast %419 : vector<1x4xf32> to vector<4x4xf32>
    %422 = arith.mulf %420, %421 : vector<4x4xf32>
    %423 = arith.addf %417, %422 : vector<4x4xf32>
    %424 = vector.extract_strided_slice %401 {offsets = [0, 3], sizes = [4, 1], strides = [1, 1]} : vector<4x9xf32> to vector<4x1xf32>
    %425 = vector.extract_strided_slice %402 {offsets = [3, 0], sizes = [1, 4], strides = [1, 1]} : vector<9x4xf32> to vector<1x4xf32>
    %426 = vector.broadcast %424 : vector<4x1xf32> to vector<4x4xf32>
    %427 = vector.broadcast %425 : vector<1x4xf32> to vector<4x4xf32>
    %428 = arith.mulf %426, %427 : vector<4x4xf32>
    %429 = arith.addf %423, %428 : vector<4x4xf32>
    %430 = vector.extract_strided_slice %401 {offsets = [0, 4], sizes = [4, 1], strides = [1, 1]} : vector<4x9xf32> to vector<4x1xf32>
    %431 = vector.extract_strided_slice %402 {offsets = [4, 0], sizes = [1, 4], strides = [1, 1]} : vector<9x4xf32> to vector<1x4xf32>
    %432 = vector.broadcast %430 : vector<4x1xf32> to vector<4x4xf32>
    %433 = vector.broadcast %431 : vector<1x4xf32> to vector<4x4xf32>
    %434 = arith.mulf %432, %433 : vector<4x4xf32>
    %435 = arith.addf %429, %434 : vector<4x4xf32>
    %436 = vector.extract_strided_slice %401 {offsets = [0, 5], sizes = [4, 1], strides = [1, 1]} : vector<4x9xf32> to vector<4x1xf32>
    %437 = vector.extract_strided_slice %402 {offsets = [5, 0], sizes = [1, 4], strides = [1, 1]} : vector<9x4xf32> to vector<1x4xf32>
    %438 = vector.broadcast %436 : vector<4x1xf32> to vector<4x4xf32>
    %439 = vector.broadcast %437 : vector<1x4xf32> to vector<4x4xf32>
    %440 = arith.mulf %438, %439 : vector<4x4xf32>
    %441 = arith.addf %435, %440 : vector<4x4xf32>
    %442 = vector.extract_strided_slice %401 {offsets = [0, 6], sizes = [4, 1], strides = [1, 1]} : vector<4x9xf32> to vector<4x1xf32>
    %443 = vector.extract_strided_slice %402 {offsets = [6, 0], sizes = [1, 4], strides = [1, 1]} : vector<9x4xf32> to vector<1x4xf32>
    %444 = vector.broadcast %442 : vector<4x1xf32> to vector<4x4xf32>
    %445 = vector.broadcast %443 : vector<1x4xf32> to vector<4x4xf32>
    %446 = arith.mulf %444, %445 : vector<4x4xf32>
    %447 = arith.addf %441, %446 : vector<4x4xf32>
    %448 = vector.extract_strided_slice %401 {offsets = [0, 7], sizes = [4, 1], strides = [1, 1]} : vector<4x9xf32> to vector<4x1xf32>
    %449 = vector.extract_strided_slice %402 {offsets = [7, 0], sizes = [1, 4], strides = [1, 1]} : vector<9x4xf32> to vector<1x4xf32>
    %450 = vector.broadcast %448 : vector<4x1xf32> to vector<4x4xf32>
    %451 = vector.broadcast %449 : vector<1x4xf32> to vector<4x4xf32>
    %452 = arith.mulf %450, %451 : vector<4x4xf32>
    %453 = arith.addf %447, %452 : vector<4x4xf32>
    %454 = vector.extract_strided_slice %401 {offsets = [0, 8], sizes = [4, 1], strides = [1, 1]} : vector<4x9xf32> to vector<4x1xf32>
    %455 = vector.extract_strided_slice %402 {offsets = [8, 0], sizes = [1, 4], strides = [1, 1]} : vector<9x4xf32> to vector<1x4xf32>
    %456 = vector.broadcast %454 : vector<4x1xf32> to vector<4x4xf32>
    %457 = vector.broadcast %455 : vector<1x4xf32> to vector<4x4xf32>
    %458 = arith.mulf %456, %457 : vector<4x4xf32>
    %459 = arith.addf %453, %458 : vector<4x4xf32>
    %460 = vector.broadcast %404 : vector<4x1xf32> to vector<4x4xf32>
    %461 = arith.addf %459, %460 : vector<4x4xf32>
    %c0_114 = arith.constant 0 : index
    %c3_115 = arith.constant 3 : index
    %c0_116 = arith.constant 0 : index
    %c0_117 = arith.constant 0 : index
    %462 = vector.load %arg3[%c0_114, %c3_115, %c0_116, %c0_117] : memref<1x4x4x9xf32, #tpu.memory_space<vmem>>, vector<1x1x4x9xf32>
    %463 = vector.shape_cast %462 : vector<1x1x4x9xf32> to vector<4x9xf32>
    %c0_118 = arith.constant 0 : index
    %c12_119 = arith.constant 12 : index
    %464 = vector.load %arg7[%c0_118, %c12_119] : memref<9x18xf32, #tpu.memory_space<vmem>>, vector<9x6xf32>
    %c0_120 = arith.constant 0 : index
    %c3_121 = arith.constant 3 : index
    %c0_122 = arith.constant 0 : index
    %c0_123 = arith.constant 0 : index
    %465 = vector.load %arg4[%c0_120, %c3_121, %c0_122, %c0_123] : memref<1x4x4x1xf32, #tpu.memory_space<vmem>>, vector<1x1x4x1xf32>
    %466 = vector.shape_cast %465 : vector<1x1x4x1xf32> to vector<4x1xf32>
    %cst_124 = arith.constant 0.000000e+00 : f32
    %467 = vector.broadcast %cst_124 : f32 to vector<4x6xf32>
    %468 = vector.extract_strided_slice %463 {offsets = [0, 0], sizes = [4, 1], strides = [1, 1]} : vector<4x9xf32> to vector<4x1xf32>
    %469 = vector.extract_strided_slice %464 {offsets = [0, 0], sizes = [1, 6], strides = [1, 1]} : vector<9x6xf32> to vector<1x6xf32>
    %470 = vector.broadcast %468 : vector<4x1xf32> to vector<4x6xf32>
    %471 = vector.broadcast %469 : vector<1x6xf32> to vector<4x6xf32>
    %472 = arith.mulf %470, %471 : vector<4x6xf32>
    %473 = arith.addf %467, %472 : vector<4x6xf32>
    %474 = vector.extract_strided_slice %463 {offsets = [0, 1], sizes = [4, 1], strides = [1, 1]} : vector<4x9xf32> to vector<4x1xf32>
    %475 = vector.extract_strided_slice %464 {offsets = [1, 0], sizes = [1, 6], strides = [1, 1]} : vector<9x6xf32> to vector<1x6xf32>
    %476 = vector.broadcast %474 : vector<4x1xf32> to vector<4x6xf32>
    %477 = vector.broadcast %475 : vector<1x6xf32> to vector<4x6xf32>
    %478 = arith.mulf %476, %477 : vector<4x6xf32>
    %479 = arith.addf %473, %478 : vector<4x6xf32>
    %480 = vector.extract_strided_slice %463 {offsets = [0, 2], sizes = [4, 1], strides = [1, 1]} : vector<4x9xf32> to vector<4x1xf32>
    %481 = vector.extract_strided_slice %464 {offsets = [2, 0], sizes = [1, 6], strides = [1, 1]} : vector<9x6xf32> to vector<1x6xf32>
    %482 = vector.broadcast %480 : vector<4x1xf32> to vector<4x6xf32>
    %483 = vector.broadcast %481 : vector<1x6xf32> to vector<4x6xf32>
    %484 = arith.mulf %482, %483 : vector<4x6xf32>
    %485 = arith.addf %479, %484 : vector<4x6xf32>
    %486 = vector.extract_strided_slice %463 {offsets = [0, 3], sizes = [4, 1], strides = [1, 1]} : vector<4x9xf32> to vector<4x1xf32>
    %487 = vector.extract_strided_slice %464 {offsets = [3, 0], sizes = [1, 6], strides = [1, 1]} : vector<9x6xf32> to vector<1x6xf32>
    %488 = vector.broadcast %486 : vector<4x1xf32> to vector<4x6xf32>
    %489 = vector.broadcast %487 : vector<1x6xf32> to vector<4x6xf32>
    %490 = arith.mulf %488, %489 : vector<4x6xf32>
    %491 = arith.addf %485, %490 : vector<4x6xf32>
    %492 = vector.extract_strided_slice %463 {offsets = [0, 4], sizes = [4, 1], strides = [1, 1]} : vector<4x9xf32> to vector<4x1xf32>
    %493 = vector.extract_strided_slice %464 {offsets = [4, 0], sizes = [1, 6], strides = [1, 1]} : vector<9x6xf32> to vector<1x6xf32>
    %494 = vector.broadcast %492 : vector<4x1xf32> to vector<4x6xf32>
    %495 = vector.broadcast %493 : vector<1x6xf32> to vector<4x6xf32>
    %496 = arith.mulf %494, %495 : vector<4x6xf32>
    %497 = arith.addf %491, %496 : vector<4x6xf32>
    %498 = vector.extract_strided_slice %463 {offsets = [0, 5], sizes = [4, 1], strides = [1, 1]} : vector<4x9xf32> to vector<4x1xf32>
    %499 = vector.extract_strided_slice %464 {offsets = [5, 0], sizes = [1, 6], strides = [1, 1]} : vector<9x6xf32> to vector<1x6xf32>
    %500 = vector.broadcast %498 : vector<4x1xf32> to vector<4x6xf32>
    %501 = vector.broadcast %499 : vector<1x6xf32> to vector<4x6xf32>
    %502 = arith.mulf %500, %501 : vector<4x6xf32>
    %503 = arith.addf %497, %502 : vector<4x6xf32>
    %504 = vector.extract_strided_slice %463 {offsets = [0, 6], sizes = [4, 1], strides = [1, 1]} : vector<4x9xf32> to vector<4x1xf32>
    %505 = vector.extract_strided_slice %464 {offsets = [6, 0], sizes = [1, 6], strides = [1, 1]} : vector<9x6xf32> to vector<1x6xf32>
    %506 = vector.broadcast %504 : vector<4x1xf32> to vector<4x6xf32>
    %507 = vector.broadcast %505 : vector<1x6xf32> to vector<4x6xf32>
    %508 = arith.mulf %506, %507 : vector<4x6xf32>
    %509 = arith.addf %503, %508 : vector<4x6xf32>
    %510 = vector.extract_strided_slice %463 {offsets = [0, 7], sizes = [4, 1], strides = [1, 1]} : vector<4x9xf32> to vector<4x1xf32>
    %511 = vector.extract_strided_slice %464 {offsets = [7, 0], sizes = [1, 6], strides = [1, 1]} : vector<9x6xf32> to vector<1x6xf32>
    %512 = vector.broadcast %510 : vector<4x1xf32> to vector<4x6xf32>
    %513 = vector.broadcast %511 : vector<1x6xf32> to vector<4x6xf32>
    %514 = arith.mulf %512, %513 : vector<4x6xf32>
    %515 = arith.addf %509, %514 : vector<4x6xf32>
    %516 = vector.extract_strided_slice %463 {offsets = [0, 8], sizes = [4, 1], strides = [1, 1]} : vector<4x9xf32> to vector<4x1xf32>
    %517 = vector.extract_strided_slice %464 {offsets = [8, 0], sizes = [1, 6], strides = [1, 1]} : vector<9x6xf32> to vector<1x6xf32>
    %518 = vector.broadcast %516 : vector<4x1xf32> to vector<4x6xf32>
    %519 = vector.broadcast %517 : vector<1x6xf32> to vector<4x6xf32>
    %520 = arith.mulf %518, %519 : vector<4x6xf32>
    %521 = arith.addf %515, %520 : vector<4x6xf32>
    %522 = vector.broadcast %466 : vector<4x1xf32> to vector<4x6xf32>
    %523 = arith.addf %521, %522 : vector<4x6xf32>
    %cst_125 = arith.constant 0.000000e+00 : f32
    %524 = vector.broadcast %cst_125 : f32 to vector<4x110xf32>
    %525 = tpu.concatenate %337, %399, %461, %523, %524 in 1 : vector<4x4xf32>, vector<4x4xf32>, vector<4x4xf32>, vector<4x6xf32>, vector<4x110xf32> -> vector<4x128xf32>
    %c1_126 = arith.constant 1 : index
    %c0_127 = arith.constant 0 : index
    %c0_128 = arith.constant 0 : index
    %c0_129 = arith.constant 0 : index
    %526 = vector.load %arg5[%c1_126, %c0_127, %c0_128, %c0_129] : memref<2x1x4x128xf32, #tpu.memory_space<vmem>>, vector<1x1x4x128xf32>
    %527 = vector.shape_cast %526 : vector<1x1x4x128xf32> to vector<4x128xf32>
    %528 = vector.shape_cast %525 : vector<4x128xf32> to vector<1x1x4x128xf32>
    tpu.vector_store %arg5[%c1_126, %c0_127, %c0_128, %c0_129], %528 {strides = array<i32>} : memref<2x1x4x128xf32, #tpu.memory_space<vmem>>, vector<1x1x4x128xf32>,
    return
  }
  func.func @transform_0(%arg0: i32, %arg1: i32) -> (i32, i32, i32, i32) {
    %c0_i32 = arith.constant 0 : i32
    %c0_i32_0 = arith.constant 0 : i32
    %c0_i32_1 = arith.constant 0 : i32
    return %arg1, %arg0, %c0_i32, %c0_i32_0 : i32, i32, i32, i32
  }
  func.func @transform_1(%arg0: i32, %arg1: i32) -> (i32, i32, i32, i32) {
    %c0_i32 = arith.constant 0 : i32
    %c0_i32_0 = arith.constant 0 : i32
    %c0_i32_1 = arith.constant 0 : i32
    %c0_i32_2 = arith.constant 0 : i32
    return %arg0, %c0_i32, %c0_i32_0, %c0_i32_1 : i32, i32, i32, i32
  }
  func.func @transform_2(%arg0: i32, %arg1: i32) -> (i32, i32, i32, i32) {
    %c0_i32 = arith.constant 0 : i32
    %c0_i32_0 = arith.constant 0 : i32
    %c0_i32_1 = arith.constant 0 : i32
    %c0_i32_2 = arith.constant 0 : i32
    return %arg0, %c0_i32, %c0_i32_0, %c0_i32_1 : i32, i32, i32, i32
  }
  func.func @transform_3(%arg0: i32, %arg1: i32) -> (i32, i32, i32, i32) {
    %c0_i32 = arith.constant 0 : i32
    %c0_i32_0 = arith.constant 0 : i32
    %c0_i32_1 = arith.constant 0 : i32
    return %arg1, %arg0, %c0_i32, %c0_i32_0 : i32, i32, i32, i32
  }
}

</mosaic_0001>

<bundles_post_ra>
// kernel: tpu_custom_call.1
= control target key start
LH: loop header
LB: loop body
LE: loop exit
PB: predicated region body
PF: predicated region fallthrough
CT: control target
= control target key end

     0   :  { %8 = vsyncpa [#allocation6], 0  ;;  %s1893_s0 = inlined_call_operand.vmem [shape: f32[2,4,3,16], index: 0, kind: input, shape index: {}]   ;;  %s1894_s1 = inlined_call_operand.vmem [shape: f32[4,4,4,9], index: 1, kind: input, shape index: {}]   ;;  %s1895_s2 = inlined_call_operand.vmem [shape: f32[4,4,4,1], index: 2, kind: input, shape index: {}]   ;;  %s1896_s3 = inlined_call_operand.hbm [shape: f32[2,4,4,128], index: 3, kind: output, shape index: {}]  }
   0x1   :  { %10 = vsyncpa [#allocation6 + $0x1], 0  ;;  %s1320_s12 = smov 0   ;;  %s1322_s13 = smov 0  }
   0x2   :  { %s1324_s14 = smov 0   ;;  %s1326_s15 = smov 0  }
   0x3   :  { %s1328_s16 = smov 0   ;;  %s1330_s17 = smov 0  }
   0x4 LB: > { %s1042_s18 = sadd.s32 4294967295, %s1281_s17   ;;  %s1043_s19 = sadd.s32 4294967294, %s1281_s17   ;;  %s1281_s17 = sphi %s1330_s17, %s16_s17   ;;  %s1277_s16 = sphi %s1328_s16, %s1935_s16   ;;  %s1273_s15 = sphi %s1326_s15, %s1934_s15   ;;  %s1269_s14 = sphi %s1324_s14, %s1933_s14   ;;  %s1265_s13 = sphi %s1322_s13, %s1932_s13   ;;  %s1261_s12 = sphi %s1320_s12, %s1931_s12  }
   0x5   : > { %s28_s20 = sadd.s32 1, %s1277_s16  ;;  %s37_s21 = sadd.s32 1, %s1269_s14 }
   0x6   : > { %p30_p0 = scmp.ge.s32.totalorder %s28_s20, 4  ;;  %p44_p1 = scmp.ne.s32.totalorder %s1269_s14, %s1265_s13 }
   0x7   : > { %p45_p2 = scmp.eq.s32.totalorder %s1281_s17, 0  ;;  %p128_p3 = scmp.eq.s32.totalorder %s1042_s18, 3 }
   0x8   : > { %s1937_s20 = smov (%p30_p0, %s28_s20), 0  ;;  %p133_p6 = scmp.ne.s32.totalorder %s1265_s13, %s1261_s12 }
   0x9   : > { %p46_p4 = por %p45_p2, %p44_p1  ;;  %p1359_p5 = por %p128_p3, %p44_p1 }
   0xa   : > { %s33_s23 = ssub.s32 %s1277_s16, %s1937_s20  ;;  %p134_p8 = scmp.eq.s32.totalorder %s1043_s19, 3 }
   0xb   : > { %p35_p7 = scmp.eq.s32.totalorder %s33_s23, 0  ;;  %p1045_p10 = scmp.ge.s32.totalorder %s1281_s17, 4 }
   0xc   : > { %p1370_p9 = por %p134_p8, %p133_p6 }
   0xd   : > { %s1368_s24 = scalar_select %p35_p7, %s1269_s14, %s37_s21  }
   0xe   : > { %150 = sbr.rel (%p1045_p10) target bundleno = 28 (0x1c), region = 16 }
  0x15   : > { %153 = sbr.rel (!%p46_p4) target bundleno = 28 (0x1c), region = 20  ;;  %s155_s26 = sand.u32 (%p46_p4), 1, %s1269_s14  }
  0x16   : > { %s1047_s27 = sshll.u32 (%p46_p4), %s1277_s16, 2  ;;  %s1046_s28 = sshll.u32 (%p46_p4), %s155_s26, 3 }
  0x17   : > { %s162_s4 = scalar_lea.vmem (%p46_p4), %s1893_s0, %s1047_s27  ;;  %s157_s5 = scalar_lea.vmem (%p46_p4), [#allocation4], %s1046_s28 }
  0x18   : > { %v178_v0 = vld [vmem:[%s162_s4] sm:$0xf] (%p46_p4)  ;;  %v180_v1 = vld [vmem:[%s162_s4 + $0x10] sm:$0xf] (%p46_p4) }
  0x19   : > { %179 = vst [vmem:[%s157_s5] sm:$0xf] (%p46_p4), %v178_v0  ;;  %181 = vst [vmem:[%s157_s5 + $0x4] sm:$0xf] (%p46_p4), %v180_v1 }
  0x1c PF: > { %p1048_p11 = scmp.ge.s32.totalorder %s1281_s17, 1  ;;  %p223_p12 = scmp.lt.s32.totalorder %s1281_s17, 5 }
  0x1e   : > { %p224_p13 = pnand %p1048_p11, %p223_p12 }
  0x20   : > { %227 = sbr.rel (%p224_p13) target bundleno = 458 (0x1ca), region = 69 }
  0x27   : > { %p264_p0 = scmp.lt.s32.totalorder %s1273_s15, 3  ;;  %s230_s6 = sand.u32 1, %s1265_s13   ;;  %v1283_v2 = vmov 1   ;;  %v1284_v3 = vmov 3   ;;  %vm275_vm0 = vcmask 157696   ;;  %v1286_v7 = vmov 2  }
  0x28   : > { %1147 = vset.pattern.permute.xlu1 %v1283_v2  ;;  %s1387_s7 = sshll.u32 %s230_s6, 3  ;;  %1149 = vset.pattern.permute.xlu0 %v1284_v3  ;;  %s1285_s21 = smov 2   ;;  %v1287_v8 = vmov 0.0   ;;  %v1288_v10 = vmov 4   ;;  %v1289_v11 = vmov 5   ;;  %v1290_v12 = vmov 6  }
  0x29   : > { %s1390_s8 = scalar_select %p264_p0, %s1273_s15, 3  ;;  %276 = vst.msk [vmem:[#allocation2] sm:$0x7] %vm275_vm0, %v1287_v8  ;;  %277 = vst.msk [vmem:[#allocation2 + $0x4] sm:$0x7] %vm275_vm0, %v1287_v8  ;;  %v1291_v13 = vmov 7  }
  0x2a   : > { %s232_s10 = scalar_lea.vmem [#allocation4], %s1387_s7  ;;  %v1292_v15 = vmov 8   ;;  %v1293_v18 = vmov 0   ;;  %vm288_vm1 = vcmask 141328   ;;  %vm292_vm2 = vcmask 141312   ;;  %s1294_s28 = smov 127  }
  0x2b   : > { %s1074_s9 = sshll.u32 %s1390_s8, 4  ;;  %v278_v4 = vld [vmem:[%s232_s10] sm:$0x7]  ;;  %v279_v6 = vld [vmem:[%s232_s10 + $0x4] sm:$0x7]  ;;  %s1295_s29 = smov 126  }
  0x2c   : > { %s1400_s19 = scalar_lea.vmem %s1894_s1, %s1074_s9  ;;  %282 = vrot.lane.b32.xlu0 %v278_v4, %s1285_s21  ;;  %s1434_s27 = scalar_lea.vmem %s1895_s2, %s1074_s9  ;;  %vm602_vm3 = vcmask 31744   ;;  %vm604_vm4 = vcmask 64512   ;;  %vm606_vm5 = vcmask 97280   ;;  %vm608_vm6 = vcmask 146432  }
  0x2d   : > { %v306_v5 = vld [vmem:[%s1400_s19] sm:$0xf]  ;;  %v1405_v9 = vld [vmem:[%s1400_s19 + $0xc] sm:$0xf]  ;;  %v1414_v14 = vld [vmem:[%s1400_s19 + $0x8] sm:$0xf] }
  0x2e   : > { %322 = vperm.xlu1 %1147, %v306_v5   ;;  %v1420_v16 = vld [vmem:[%s1400_s19 + $0x4] sm:$0xf]  ;;  %v309_v19 = vld [vmem:[%s1434_s27] sm:$0xf]  ;;  %v1061_v20 = vld [vmem:[%s1434_s27 + $0xc] sm:$0xf] }
  0x2f   : > { %v1423_v17 = vld [vmem:[%s1400_s19 + $0x4] sm:$0xf]  ;;  %v1446_v21 = vld [vmem:[%s1400_s19] sm:$0xf]  ;;  %v1452_v22 = vld [vmem:[%s1400_s19 + $0xc] sm:$0xf] }
  0x30   : > { %284 = vrot.lane.b32.xlu0 %v279_v6, %s1285_s21  ;;  %v1057_v23 = vld [vmem:[%s1434_s27 + $0x4] sm:$0xf]  ;;  %v1472_v24 = vld [vmem:[%s1400_s19 + $0x8] sm:$0xf]  ;;  %v629_v45 = vld [vmem:[%s1434_s27] sm:$0xf] }
  0x31   : > { %v1059_v25 = vld [vmem:[%s1434_s27 + $0x8] sm:$0xf]  ;;  %s1803_s30 = scalar_lea.vmem [#allocation5], %s1387_s7  ;;  %s1071_s5 = sshll.u32 %s1273_s15, 6 }
  0x32   : > { %1148 = vset.pattern.permute.xlu1 %v1286_v7  ;;  %v1066_v29 = vld [vmem:[%s1434_s27 + $0x8] sm:$0xf]  ;;  %s938_s4 = sshll.u32 %s1803_s30, 4  ;;  %s1840_s9 = scalar_lea.hbm %s1896_s3, %s1071_s5  ;;  %s1835_s4 = int_to_ptr.vmem [resolvable:$true] %s938_s4 }
  0x33   : > { %332 = vperm.xlu1 %1148, %v306_v5   ;;  %s1847_s15 = scalar_lea.sflag [#allocation6], %s230_s6  ;;  %s1203_s10 = scalar_lea.vmem %s1835_s4, 128 }
  0x34   : > { %342 = vperm.xlu0 %1149, %v306_v5   ;;  %p1204_p1 = scmp.ne.s32.totalorder %s1835_s4, %s1203_s10  ;;  %s1296_s11 = smov [#allocation5]  }
  0x35   : > { %s1207_s18 = sshll.u32 %s1296_s11, 4  ;;  %s1208_s18 = int_to_ptr.vmem [resolvable:$false] %s1207_s18 }
  0x36   : > { %p1205_p2 = pnand %p1204_p1, %p1359_p5  ;;  %s1209_s19 = scalar_lea.vmem %s1208_s18, 256 }
  0x37   : > { %1150 = vset.pattern.permute.xlu1 %v1288_v10  ;;  %p1210_p4 = scmp.lt.s32.totalorder %s1835_s4, %s1208_s18  ;;  %p1211_p6 = scmp.lt.s32.totalorder %s1209_s19, %s1203_s10 }
  0x38   : > { %352 = vperm.xlu1 %1150, %v306_v5   ;;  %561 = vperm.xlu0 %1149, %v1405_v9   ;;  %p1206_p3 = pneg %p1205_p2 }
  0x39   : > { %p1212_p7 = por %p1211_p6, %p1210_p4 }
  0x3b   : > { %p1213_p8 = pnand %p1212_p7, %p1206_p3 }
  0x3c   : > { %1151 = vset.pattern.permute.xlu1 %v1289_v11  ;;  %1169 = vset.pattern.permute.xlu0 %v1290_v12 }
  0x3d   : > { %362 = vperm.xlu1 %1151, %v306_v5   ;;  %372 = vperm.xlu0 %1169, %v306_v5  }
  0x41   : > { %1152 = vset.pattern.permute.xlu1 %v1291_v13  ;;  %579 = vperm.xlu0 %1169, %v1405_v9  }
  0x42   : > { %382 = vperm.xlu1 %1152, %v306_v5  }
  0x45   : > { %1172 = vset.pattern.permute.xlu0 %v1283_v2 }
  0x46   : > { %1153 = vset.pattern.permute.xlu1 %v1292_v15  ;;  %484 = vperm.xlu0 %1172, %v1414_v14  }
  0x47   : > { %392 = vperm.xlu1 %1153, %v306_v5  }
  0x4a   : > { %737 = vperm.xlu0 %1172, %v1420_v16  }
  0x4b   : > { %1154 = vset.pattern.permute.xlu1 %v1293_v18 }
  0x4c   : > { %413 = vperm.xlu1 %1154, %v1423_v17  }
  0x4e   : > { %1181 = vset.pattern.permute.xlu0 %v1293_v18 }
  0x4f   : > { %312 = vperm.xlu0 %1181, %v306_v5  }
  0x50   : > { %1155 = vset.pattern.permute.xlu1 %v1283_v2 }
  0x51   : > { %419 = vperm.xlu1 %1155, %v1423_v17  }
  0x53   : > { %403 = vperm.xlu0 %1181, %v309_v19  }
  0x55   : > { %1156 = vset.pattern.permute.xlu1 %v1284_v3 }
  0x56   : > { %431 = vperm.xlu1 %1156, %v1423_v17  }
  0x57   : > { %543 = vperm.xlu0 %1181, %v1405_v9  }
  0x5a   : > { %1157 = vset.pattern.permute.xlu1 %v1288_v10 }
  0x5b   : > { %437 = vperm.xlu1 %1157, %v1423_v17   ;;  %598 = vperm.xlu0 %1181, %v1061_v20  }
  0x5f   : > { %1158 = vset.pattern.permute.xlu1 %v1290_v12  ;;  %632 = vperm.xlu0 %1181, %v1446_v21  }
  0x60   : > { %449 = vperm.xlu1 %1158, %v1423_v17  }
  0x63   : > { %857 = vperm.xlu0 %1181, %v1452_v22  }
  0x64   : > { %1159 = vset.pattern.permute.xlu1 %v1291_v13 }
  0x65   : > { %455 = vperm.xlu1 %1159, %v1423_v17  }
  0x67   : > { %1188 = vset.pattern.permute.xlu0 %v1286_v7 }
  0x68   : > { %425 = vperm.xlu0 %1188, %v1423_v17  }
  0x69   : > { %1160 = vset.pattern.permute.xlu1 %v1293_v18 }
  0x6a   : > { %468 = vperm.xlu1 %1160, %v1057_v23   ;;  %v1068_v23 = vld [vmem:[%s1434_s27 + $0xc] sm:$0xf] }
  0x6c   : > { %652 = vperm.xlu0 %1188, %v1446_v21  }
  0x6e   : > { %478 = vperm.xlu1 %1160, %v1414_v14  }
  0x70   : > { %869 = vperm.xlu0 %1188, %v1452_v22  }
  0x72   : > { %1161 = vset.pattern.permute.xlu1 %v1286_v7 }
  0x73   : > { %490 = vperm.xlu1 %1161, %v1414_v14  }
  0x74   : > { %1190 = vset.pattern.permute.xlu0 %v1288_v10 }
  0x75   : > { %502 = vperm.xlu0 %1190, %v1414_v14  }
  0x77   : > { %1162 = vset.pattern.permute.xlu1 %v1284_v3 }
  0x78   : > { %496 = vperm.xlu1 %1162, %v1414_v14  }
  0x79   : > { %755 = vperm.xlu0 %1190, %v1420_v16  }
  0x7c   : > { %1163 = vset.pattern.permute.xlu1 %v1289_v11 }
  0x7d   : > { %508 = vperm.xlu1 %1163, %v1414_v14   ;;  %818 = vperm.xlu0 %1190, %v1472_v24  }
  0x81   : > { %1164 = vset.pattern.permute.xlu1 %v1290_v12  ;;  %1192 = vset.pattern.permute.xlu0 %v1289_v11 }
  0x82   : > { %514 = vperm.xlu1 %1164, %v1414_v14   ;;  %443 = vperm.xlu0 %1192, %v1423_v17  }
  0x86   : > { %1165 = vset.pattern.permute.xlu1 %v1292_v15  ;;  %682 = vperm.xlu0 %1192, %v1446_v21  }
  0x87   : > { %526 = vperm.xlu1 %1165, %v1414_v14  }
  0x8a   : > { %887 = vperm.xlu0 %1192, %v1452_v22  }
  0x8b   : > { %1166 = vset.pattern.permute.xlu1 %v1293_v18 }
  0x8c   : > { %533 = vperm.xlu1 %1166, %v1059_v25   ;;  %v315_v25 = vlaneseq }
  0x8e   : > { %1195 = vset.pattern.permute.xlu0 %v1291_v13 }
  0x8f   : > { %520 = vperm.xlu0 %1195, %v1414_v14  }
  0x90   : > { %1167 = vset.pattern.permute.xlu1 %v1283_v2 }
  0x91   : > { %549 = vperm.xlu1 %1167, %v1405_v9  }
  0x93   : > { %773 = vperm.xlu0 %1195, %v1420_v16  }
  0x95   : > { %1168 = vset.pattern.permute.xlu1 %v1286_v7 }
  0x96   : > { %555 = vperm.xlu1 %1168, %v1405_v9  }
  0x97   : > { %836 = vperm.xlu0 %1195, %v1472_v24  }
  0x9a   : > { %1170 = vset.pattern.permute.xlu1 %v1288_v10 }
  0x9b   : > { %567 = vperm.xlu1 %1170, %v1405_v9   ;;  %1197 = vset.pattern.permute.xlu0 %v1292_v15 }
  0x9c   : > { %461 = vperm.xlu0 %1197, %v1423_v17  }
  0x9e   : > { %v283_v26 = vpop.permute.xlu0 %282 }
  0x9f   : > { %1171 = vset.pattern.permute.xlu1 %v1289_v11  ;;  %289 = vst.msk [vmem:[#allocation2] sm:$0x7] %vm288_vm1, %v283_v26 }
  0xa0   : > { %573 = vperm.xlu1 %1171, %v1405_v9   ;;  %712 = vperm.xlu0 %1197, %v1446_v21  }
  0xa2   : > { %v285_v27 = vpop.permute.xlu0 %284 }
  0xa3   : > { %290 = vst.msk [vmem:[#allocation2 + $0x4] sm:$0x7] %vm288_vm1, %v285_v27 }
  0xa4   : > { %1173 = vset.pattern.permute.xlu1 %v1291_v13  ;;  %842 = vperm.xlu0 %1197, %v1472_v24  }
  0xa5   : > { %585 = vperm.xlu1 %1173, %v1405_v9  }
  0xa6   : > { %v291_v28 = vld [vmem:[#allocation2] sm:$0x7] }
  0xa7   : > { %293 = vst.msk [vmem:[#allocation3] sm:$0x7] %vm292_vm2, %v291_v28  ;;  %v294_v32 = vld [vmem:[#allocation2] sm:$0x7] }
  0xa8   : > { %1202 = vset.pattern.permute.xlu0 %v1293_v18  ;;  %v300_v34 = vld [vmem:[#allocation2] sm:$0x7] }
  0xa9   : > { %1174 = vset.pattern.permute.xlu1 %v1292_v15  ;;  %849 = vperm.xlu0 %1202, %v1066_v29  }
  0xaa   : > { %591 = vperm.xlu1 %1174, %v1405_v9   ;;  %v614_v36 = vld [vmem:[#allocation2 + $0x4] sm:$0x7] }
  0xab   : > { %v620_v38 = vld [vmem:[#allocation2 + $0x4] sm:$0x7] }
  0xad   : > { %v1510_v30 = vpop.permute.xlu1 %322 }
  0xae   : > { %1175 = vset.pattern.permute.xlu1 %v1283_v2 }
  0xaf   : > { %642 = vperm.xlu1 %1175, %v1446_v21  }
  0xb2   : > { %v1514_v31 = vpop.permute.xlu1 %332 }
  0xb3   : > { %1176 = vset.pattern.permute.xlu1 %v1284_v3  ;;  %v1525_v39 = vpop.permute.xlu0 %342 }
  0xb4   : > { %662 = vperm.xlu1 %1176, %v1446_v21  }
  0xb7   : > { %v1518_v33 = vpop.permute.xlu1 %352  ;;  %v1530_v41 = vpop.permute.xlu0 %561 }
  0xb8   : > { %296 = vrot.lane.b32.xlu1 %v294_v32, %s1294_s28 }
  0xb9   : > { %1177 = vset.pattern.permute.xlu1 %v1288_v10 }
  0xbc   : > { %v1521_v35 = vpop.permute.xlu1 %362  ;;  %302 = vrot.lane.b32.xlu1 %v300_v34, %s1295_s29  ;;  %v1536_v43 = vpop.permute.xlu0 %372 }
  0xc0   : > { %616 = vrot.lane.b32.xlu1 %v614_v36, %s1294_s28  ;;  %v1545_v47 = vpop.permute.xlu0 %579  ;;  %v612_v36 = vld [vmem:[#allocation2 + $0x4] sm:$0x7] }
  0xc1   : > { %v1523_v37 = vpop.permute.xlu1 %382  ;;  %1899 = vst [vmem:[#allocation8_spill] sm:$0xff] %v1545_v47 }
  0xc4   : > { %622 = vrot.lane.b32.xlu1 %v620_v38, %s1295_s29 }
  0xc5   : > { %v1551_v49 = vpop.permute.xlu0 %484 }
  0xc6   : > { %v1527_v40 = vpop.permute.xlu1 %392 }
  0xc8   : > { %672 = vperm.xlu1 %1177, %v1446_v21  }
  0xc9   : > { %v1557_v51 = vpop.permute.xlu0 %737 }
  0xcb   : > { %v1532_v42 = vpop.permute.xlu1 %413 }
  0xcc   : > { %1178 = vset.pattern.permute.xlu1 %v1290_v12 }
  0xcd   : > { %692 = vperm.xlu1 %1178, %v1446_v21  }
  0xce   : > { %v1563_v53 = vpop.permute.xlu0 %312 }
  0xd0   : > { %v1538_v44 = vpop.permute.xlu1 %419 }
  0xd1   : > { %1179 = vset.pattern.permute.xlu1 %v1291_v13 }
  0xd2   : > { %702 = vperm.xlu1 %1179, %v1446_v21   ;;  %v1571_v56 = vpop.permute.xlu0 %403 }
  0xd3   : > { %1901 = vst [vmem:[#allocation10_spill] sm:$0xff] %v1571_v56 }
  0xd5   : > { %v1543_v46 = vpop.permute.xlu1 %431 }
  0xd6   : > { %1180 = vset.pattern.permute.xlu1 %v1293_v18  ;;  %v1578_v58 = vpop.permute.xlu0 %543 }
  0xd7   : > { %723 = vperm.xlu1 %1180, %v629_v45  }
  0xda   : > { %v1548_v48 = vpop.permute.xlu1 %437  ;;  %v1585_v60 = vpop.permute.xlu0 %598 }
  0xdb   : > { %731 = vperm.xlu1 %1180, %v1420_v16   ;;  %1902 = vst [vmem:[#allocation11_spill] sm:$0xff] %v1585_v60 }
  0xde   : > { %v1590_v62 = vpop.permute.xlu0 %632 }
  0xdf   : > { %v1553_v50 = vpop.permute.xlu1 %449  ;;  %1182 = vset.pattern.permute.xlu1 %v1286_v7 }
  0xe0   : > { %743 = vperm.xlu1 %1182, %v1420_v16  }
  0xe2   : > { %v1596_v0 = vpop.permute.xlu0 %857 }
  0xe3   : > { %1904 = vst [vmem:[#allocation13_spill] sm:$0xff] %v1596_v0 }
  0xe4   : > { %v1559_v52 = vpop.permute.xlu1 %455  ;;  %1183 = vset.pattern.permute.xlu1 %v1284_v3 }
  0xe5   : > { %749 = vperm.xlu1 %1183, %v1420_v16  }
  0xe7   : > { %v1605_v4 = vpop.permute.xlu0 %425 }
  0xe9   : > { %v1565_v54 = vpop.permute.xlu1 %468  ;;  %1184 = vset.pattern.permute.xlu1 %v1289_v11 }
  0xea   : > { %1900 = vst [vmem:[#allocation9_spill] sm:$0xff] %v1565_v54  ;;  %761 = vperm.xlu1 %1184, %v1420_v16  }
  0xeb   : > { %v1611_v6 = vpop.permute.xlu0 %652 }
  0xed   : > { %v1569_v55 = vpop.permute.xlu1 %478 }
  0xee   : > { %1185 = vset.pattern.permute.xlu1 %v1290_v12 }
  0xef   : > { %767 = vperm.xlu1 %1185, %v1420_v16  }
  0xf2   : > { %v1575_v57 = vpop.permute.xlu1 %490 }
  0xf3   : > { %1186 = vset.pattern.permute.xlu1 %v1293_v18 }
  0xf4   : > { %794 = vperm.xlu1 %1186, %v1472_v24  }
  0xf7   : > { %v1581_v59 = vpop.permute.xlu1 %496 }
  0xf8   : > { %1187 = vset.pattern.permute.xlu1 %v1283_v2 }
  0xf9   : > { %800 = vperm.xlu1 %1187, %v1472_v24  }
  0xfc   : > { %v1587_v61 = vpop.permute.xlu1 %508 }
  0xfd   : > { %863 = vperm.xlu1 %1187, %v1452_v22  }
 0x101   : > { %v1592_v63 = vpop.permute.xlu1 %514  ;;  %1189 = vset.pattern.permute.xlu1 %v1286_v7 }
 0x102   : > { %1903 = vst [vmem:[#allocation12_spill] sm:$0xff] %v1592_v63  ;;  %806 = vperm.xlu1 %1189, %v1472_v24  }
 0x106   : > { %v1598_v1 = vpop.permute.xlu1 %526  ;;  %1191 = vset.pattern.permute.xlu1 %v1284_v3  ;;  %v1617_v3 = vpop.permute.xlu0 %869 }
 0x107   : > { %1905 = vst [vmem:[#allocation14_spill] sm:$0xff] %v1598_v1  ;;  %812 = vperm.xlu1 %1191, %v1472_v24   ;;  %1907 = vst [vmem:[#allocation16_spill] sm:$0xff] %v1617_v3 }
 0x10a   : > { %v1623_v9 = vpop.permute.xlu0 %502 }
 0x10b   : > { %v1602_v2 = vpop.permute.xlu1 %533  ;;  %875 = vperm.xlu1 %1191, %v1452_v22  }
 0x10c   : > { %1906 = vst [vmem:[#allocation15_spill] sm:$0xff] %v1602_v2 }
 0x10f   : > { %1193 = vset.pattern.permute.xlu1 %v1288_v10 }
 0x110   : > { %v1608_v5 = vpop.permute.xlu1 %549  ;;  %881 = vperm.xlu1 %1193, %v1452_v22  }
 0x114   : > { %1194 = vset.pattern.permute.xlu1 %v1289_v11  ;;  %v1630_v11 = vpop.permute.xlu0 %755 }
 0x115   : > { %v1614_v7 = vpop.permute.xlu1 %555  ;;  %824 = vperm.xlu1 %1194, %v1472_v24   ;;  %1909 = vst [vmem:[#allocation18_spill] sm:$0xff] %v1630_v11 }
 0x119   : > { %1196 = vset.pattern.permute.xlu1 %v1290_v12  ;;  %v1636_v12 = vpop.permute.xlu0 %818 }
 0x11a   : > { %v1620_v8 = vpop.permute.xlu1 %567  ;;  %830 = vperm.xlu1 %1196, %v1472_v24   ;;  %1911 = vst [vmem:[#allocation20_spill] sm:$0xff] %v1636_v12 }
 0x11d   : > { %v1642_v20 = vpop.permute.xlu0 %443 }
 0x11e   : > { %893 = vperm.xlu1 %1196, %v1452_v22  }
 0x11f   : > { %v1626_v10 = vpop.permute.xlu1 %573 }
 0x120   : > { %1908 = vst [vmem:[#allocation17_spill] sm:$0xff] %v1626_v10 }
 0x122   : > { %1198 = vset.pattern.permute.xlu1 %v1292_v15 }
 0x123   : > { %779 = vperm.xlu1 %1198, %v1420_v16   ;;  %v1064_v16 = vld [vmem:[%s1434_s27 + $0x4] sm:$0xf] }
 0x124   : > { %v1632_v14 = vpop.permute.xlu1 %585 }
 0x125   : > { %1910 = vst [vmem:[#allocation19_spill] sm:$0xff] %v1632_v14 }
 0x127   : > { %1199 = vset.pattern.permute.xlu1 %v1291_v13  ;;  %v1647_v13 = vpop.permute.xlu0 %682 }
 0x128   : > { %899 = vperm.xlu1 %1199, %v1452_v22  }
 0x129   : > { %v1638_v17 = vpop.permute.xlu1 %591 }
 0x12a   : > { %1912 = vst [vmem:[#allocation21_spill] sm:$0xff] %v1638_v17 }
 0x12b   : > { %v1650_v26 = vpop.permute.xlu0 %887 }
 0x12c   : > { %1200 = vset.pattern.permute.xlu1 %v1292_v15  ;;  %1913 = vst [vmem:[#allocation22_spill] sm:$0xff] %v1650_v26 }
 0x12d   : > { %905 = vperm.xlu1 %1200, %v1452_v22   ;;  %v316_v22 = vshrl.u32 %v315_v25, 7 }
 0x12e   : > { %v643_v19 = vpop.permute.xlu1 %642 }
 0x12f   : > { %v317_v28 = vsub.s32 0, %v316_v22  ;;  %v327_v29 = vsub.s32 1, %v316_v22  ;;  %v1653_v32 = vpop.permute.xlu0 %520  ;;  %v347_v34 = vsub.s32 3, %v316_v22  ;;  %v357_v26 = vsub.s32 4, %v316_v22 }
 0x130   : > { %1914 = vst [vmem:[#allocation23_spill] sm:$0xff] %v1653_v32  ;;  %v367_v60 = vsub.s32 5, %v316_v22  ;;  %v377_v2 = vsub.s32 6, %v316_v22  ;;  %v387_v56 = vsub.s32 7, %v316_v22 }
 0x131   : > { %1201 = vset.pattern.permute.xlu1 %v1293_v18  ;;  %v337_v18 = vsub.s32 2, %v316_v22 }
 0x132   : > { %786 = vperm.xlu1 %1201, %v1064_v16  }
 0x133   : > { %v663_v21 = vpop.permute.xlu1 %662 }
 0x136   : > { %912 = vperm.xlu1 %1201, %v1068_v23  }
 0x137   : > { %v297_v24 = vpop.permute.xlu1 %296 }
 0x138   : > { %299 = vst.msk [vmem:[#allocation3 + $0x3] sm:$0x7] %vm292_vm2, %v297_v24 }
 0x13b   : > { %v303_v15 = vpop.permute.xlu1 %302 }
 0x13c   : > { %305 = vst.msk [vmem:[#allocation3 + $0x6] sm:$0x7] %vm292_vm2, %v303_v15 }
 0x13f   : > { %v617_v27 = vpop.permute.xlu1 %616 }
 0x143   : > { %v307_v38 = vld [vmem:[#allocation3] sm:$0xff]  ;;  %v1655_v45 = vld [vmem:[#allocation3 + $0x8] ss:$0 sm:$0xff]  ;;  %v623_v16 = vpop.permute.xlu1 %622 }
 0x144   : > { %613 = vst.msk [vmem:[#allocation3] sm:$0x7] %vm292_vm2, %v612_v36  ;;  %619 = vst.msk [vmem:[#allocation3 + $0x3] sm:$0x7] %vm292_vm2, %v617_v27  ;;  %v1660_v23 = vrot.slane %v307_v38, %v317_v28  ;;  %v1662_v24 = vrot.slane %v307_v38, %v327_v29  ;;  %v1664_v25 = vrot.slane %v307_v38, %v337_v18  ;;  %v774_v36 = vpop.permute.xlu0 %773 }
 0x145   : > { %625 = vst.msk [vmem:[#allocation3 + $0x6] sm:$0x7] %vm292_vm2, %v623_v16  ;;  %v1666_v15 = vrot.slane %v307_v38, %v347_v34  ;;  %v1674_v17 = vrot.slane %v307_v38, %v357_v26  ;;  %v1686_v32 = vrot.slane %v307_v38, %v377_v2 }
 0x146   : > { %v416_v12 = vmul.f32 %v1532_v42, %v1660_v23  ;;  %v422_v3 = vmul.f32 %v1538_v44, %v1662_v24  ;;  %v428_v16 = vmul.f32 %v1605_v4, %v1664_v25  ;;  %v1684_v4 = vrot.slane %v307_v38, %v367_v60 }
 0x147   : > { %v673_v0 = vpop.permute.xlu1 %672  ;;  %v434_v14 = vmul.f32 %v1543_v46, %v1666_v15  ;;  %v440_v46 = vmul.f32 %v1548_v48, %v1674_v17  ;;  %v329_v22 = vmul.f32 %v1662_v24, %v1510_v30 }
 0x148   : > { %v423_v27 = vadd.f32 %v422_v3, %v416_v12  ;;  %v837_v12 = vpop.permute.xlu0 %836 }
 0x14a   : > { %v429_v11 = vadd.f32 %v428_v16, %v423_v27 }
 0x14c   : > { %v627_v54 = vld [vmem:[#allocation3] sm:$0xff]  ;;  %v435_v42 = vadd.f32 %v434_v14, %v429_v11  ;;  %v693_v3 = vpop.permute.xlu1 %692 }
 0x14d   : > { %v1678_v1 = vrot.slane %v627_v54, %v317_v28  ;;  %v1680_v44 = vrot.slane %v627_v54, %v327_v29  ;;  %v1682_v47 = vrot.slane %v627_v54, %v337_v18  ;;  %v1688_v10 = vrot.slane %v627_v54, %v347_v34 }
 0x14e   : > { %v1690_v27 = vrot.slane %v627_v54, %v357_v26  ;;  %v1701_v18 = vrot.slane %v627_v54, %v377_v2  ;;  %v319_v26 = vmul.f32 %v1660_v23, %v1563_v53  ;;  %v441_v34 = vadd.f32 %v440_v46, %v435_v42  ;;  %v462_v42 = vpop.permute.xlu0 %461 }
 0x14f   : > { %v639_v11 = vmul.f32 %v1678_v1, %v1590_v62  ;;  %v649_v14 = vmul.f32 %v1680_v44, %v643_v19  ;;  %v669_v28 = vmul.f32 %v1688_v10, %v663_v21  ;;  %v659_v48 = vmul.f32 %v1682_v47, %v1611_v6 }
 0x150   : > { %v679_v29 = vmul.f32 %v1690_v27, %v673_v0  ;;  %v1707_v62 = vrot.slane %v627_v54, %v387_v56  ;;  %v1709_v19 = vrot.slane %v307_v38, %v387_v56  ;;  %v699_v30 = vmul.f32 %v1701_v18, %v693_v3 }
 0x151   : > { %v650_v16 = vadd.f32 %v649_v14, %v639_v11  ;;  %v703_v63 = vpop.permute.xlu1 %702  ;;  %v446_v0 = vmul.f32 %v1642_v20, %v1684_v4  ;;  %v1714_v21 = vrot.slane %v627_v54, %v367_v60  ;;  %v339_v6 = vmul.f32 %v1664_v25, %v1514_v31 }
 0x152   : > { %v709_v53 = vmul.f32 %v1707_v62, %v703_v63  ;;  %v1718_v46 = vmul.f32 %v837_v12, %v1707_v62  ;;  %v330_v56 = vadd.f32 %v329_v22, %v319_v26  ;;  %v452_v3 = vmul.f32 %v1553_v50, %v1686_v32 }
 0x153   : > { %v660_v2 = vadd.f32 %v659_v48, %v650_v16  ;;  %v447_v38 = vadd.f32 %v446_v0, %v441_v34  ;;  %v1725_v20 = vmul.f32 %v774_v36, %v1707_v62  ;;  %v458_v54 = vmul.f32 %v1559_v52, %v1709_v19  ;;  %v713_v34 = vpop.permute.xlu0 %712 }
 0x154   : > { %v340_v60 = vadd.f32 %v339_v6, %v330_v56  ;;  %v349_v63 = vmul.f32 %v1666_v15, %v1525_v39  ;;  %v481_v12 = vmul.f32 %v1569_v55, %v1660_v23  ;;  %v689_v14 = vmul.f32 %v1714_v21, %v1647_v13 }
 0x155   : > { %v670_v11 = vadd.f32 %v669_v28, %v660_v2  ;;  %v359_v50 = vmul.f32 %v1674_v17, %v1518_v33  ;;  %v369_v36 = vmul.f32 %v1684_v4, %v1521_v35  ;;  %v1739_v28 = vld [vmem:[#allocation3 + $0x8] ss:$0 sm:$0xff]  ;;  %v389_v52 = vmul.f32 %v1709_v19, %v1523_v37 }
 0x156   : > { %v724_v22 = vpop.permute.xlu1 %723  ;;  %v350_v39 = vadd.f32 %v349_v63, %v340_v60  ;;  %v552_v55 = vmul.f32 %v1608_v5, %v1662_v24  ;;  %v453_v13 = vadd.f32 %v452_v3, %v447_v38  ;;  %v379_v33 = vmul.f32 %v1686_v32, %v1536_v43 }
 0x157   : > { %v680_v31 = vadd.f32 %v679_v29, %v670_v11  ;;  %v487_v29 = vmul.f32 %v1551_v49, %v1662_v24  ;;  %v493_v35 = vmul.f32 %v1575_v57, %v1664_v25  ;;  %v499_v37 = vmul.f32 %v1581_v59, %v1666_v15 }
 0x158   : > { %v360_v16 = vadd.f32 %v359_v50, %v350_v39  ;;  %v546_v5 = vmul.f32 %v1578_v58, %v1660_v23  ;;  %v719_v0 = vmul.f32 %v1739_v28, %v713_v34  ;;  %v740_v2 = vmul.f32 %v1557_v51, %v1680_v44 }
 0x159   : > { %v690_v26 = vadd.f32 %v689_v14, %v680_v31  ;;  %v488_v48 = vadd.f32 %v487_v29, %v481_v12  ;;  %v558_v43 = vmul.f32 %v1614_v7, %v1664_v25  ;;  %v459_v59 = vadd.f32 %v458_v54, %v453_v13 }
 0x15a   : > { %v732_v24 = vpop.permute.xlu1 %731  ;;  %v370_v6 = vadd.f32 %v369_v36, %v360_v16  ;;  %v553_v38 = vadd.f32 %v552_v55, %v546_v5  ;;  %v505_v58 = vmul.f32 %v1623_v9, %v1674_v17  ;;  %v564_v23 = vmul.f32 %v1530_v41, %v1666_v15  ;;  %v1920_v16 = vld [vmem:[#allocation9_spill] sm:$0xff]  ;;  %v1921_v5 = vld [vmem:[#allocation10_spill] sm:$0xff] }
 0x15b   : > { %v700_v49 = vadd.f32 %v699_v30, %v690_v26  ;;  %v734_v57 = vmul.f32 %v732_v24, %v1678_v1  ;;  %v494_v56 = vadd.f32 %v493_v35, %v488_v48  ;;  %v464_v63 = vmul.f32 %v1655_v45, %v462_v42  ;;  %v1915_v42 = vld [vmem:[#allocation12_spill] sm:$0xff]  ;;  %v1919_v35 = vld [vmem:[#allocation14_spill] sm:$0xff] }
 0x15c   : > { %v380_v11 = vadd.f32 %v379_v33, %v370_v6  ;;  %v559_v51 = vadd.f32 %v558_v43, %v553_v38  ;;  %v399_v25 = vmul.f32 %v1655_v45, %v1527_v40  ;;  %v511_v54 = vmul.f32 %v1587_v61, %v1684_v4  ;;  %v1916_v40 = vld [vmem:[#allocation17_spill] sm:$0xff] }
 0x15d   : > { %v710_v3 = vadd.f32 %v709_v53, %v700_v49  ;;  %v741_v30 = vadd.f32 %v740_v2, %v734_v57  ;;  %v500_v60 = vadd.f32 %v499_v37, %v494_v56  ;;  %v570_v9 = vmul.f32 %v1620_v8, %v1674_v17  ;;  %v1917_v8 = vld [vmem:[#allocation23_spill] sm:$0xff]  ;;  %v1923_v57 = vld [vmem:[#allocation18_spill] sm:$0xff]  ;;  %v1924_v56 = vld [vmem:[#allocation21_spill] sm:$0xff] }
 0x15e   : > { %v390_v12 = vadd.f32 %v389_v52, %v380_v11  ;;  %v565_v41 = vadd.f32 %v564_v23, %v559_v51  ;;  %v465_v15 = vadd.f32 %v464_v63, %v459_v59  ;;  %v517_v36 = vmul.f32 %v1915_v42, %v1686_v32  ;;  %v1922_v49 = vld [vmem:[#allocation19_spill] sm:$0xff] }
 0x15f   : > { %v720_v7 = vadd.f32 %v719_v0, %v710_v3  ;;  %v744_v53 = vpop.permute.xlu1 %743  ;;  %v506_v31 = vadd.f32 %v505_v58, %v500_v60  ;;  %v576_v55 = vmul.f32 %v1916_v40, %v1684_v4  ;;  %v523_v17 = vmul.f32 %v1917_v8, %v1709_v19  ;;  %v1925_v11 = vld [vmem:[#allocation15_spill] sm:$0xff] }
 0x160   : > { %v746_v50 = vmul.f32 %v744_v53, %v1682_v47  ;;  %v400_v39 = vadd.f32 %v399_v25, %v390_v12  ;;  %v571_v29 = vadd.f32 %v570_v9, %v565_v41  ;;  %v529_v34 = vmul.f32 %v1655_v45, %v1919_v35  ;;  %v1926_v63 = vld [vmem:[#allocation11_spill] sm:$0xff] }
 0x161   : > { %v1772_v14 = vadd.f32 %v724_v22, %v720_v7  ;;  %v512_v61 = vadd.f32 %v511_v54, %v506_v31  ;;  %v1918_v22 = vld [vmem:[#allocation8_spill] sm:$0xff]  ;;  %v471_v37 = vadd.f32 %v1920_v16, %v465_v15  ;;  %v588_v24 = vmul.f32 %v1922_v49, %v1709_v19 }
 0x162   : > { %v747_v52 = vadd.f32 %v746_v50, %v741_v30  ;;  %v577_v26 = vadd.f32 %v576_v55, %v571_v29  ;;  %v582_v33 = vmul.f32 %v1918_v22, %v1686_v32  ;;  %v406_v4 = vadd.f32 %v1921_v5, %v400_v39  ;;  %v1927_v55 = vld [vmem:[#allocation13_spill] sm:$0xff]  ;;  %v1929_v16 = vld [vmem:[#allocation20_spill] sm:$0xff] }
 0x163   : > { %v518_v13 = vadd.f32 %v517_v36, %v512_v61  ;;  %v758_v6 = vmul.f32 %v1923_v57, %v1690_v27  ;;  %v594_v38 = vmul.f32 %v1655_v45, %v1924_v56  ;;  %v860_v61 = vmul.f32 %v1927_v55, %v1678_v1 }
 0x164   : > { %v750_v48 = vpop.permute.xlu1 %749  ;;  %v583_v43 = vadd.f32 %v582_v33, %v577_v26  ;;  %v603_v58 = vsel %vm602_vm3, %v406_v4, %v471_v37  ;;  %v821_v37 = vmul.f32 %v1929_v16, %v1690_v27 }
 0x165   : > { %v752_v0 = vmul.f32 %v750_v48, %v1688_v10  ;;  %v524_v2 = vadd.f32 %v523_v17, %v518_v13  ;;  %v1928_v13 = vld [vmem:[#allocation16_spill] sm:$0xff] }
 0x166   : > { %v589_v3 = vadd.f32 %v588_v24, %v583_v43  ;;  %v872_v8 = vmul.f32 %v1928_v13, %v1682_v47  ;;  %v1930_v24 = vld [vmem:[#allocation22_spill] sm:$0xff] }
 0x167   : > { %v753_v32 = vadd.f32 %v752_v0, %v747_v52  ;;  %v530_v59 = vadd.f32 %v529_v34, %v524_v2 }
 0x168   : > { %v595_v19 = vadd.f32 %v594_v38, %v589_v3 }
 0x169   : > { %v762_v23 = vpop.permute.xlu1 %761  ;;  %v759_v30 = vadd.f32 %v758_v6, %v753_v32  ;;  %v536_v60 = vadd.f32 %v1925_v11, %v530_v59  ;;  %v843_v11 = vpop.permute.xlu0 %842 }
 0x16a   : > { %v764_v51 = vmul.f32 %v762_v23, %v1714_v21  ;;  %v601_v7 = vadd.f32 %v1926_v63, %v595_v19 }
 0x16b   : > { %v605_v25 = vsel %vm604_vm4, %v603_v58, %v536_v60 }
 0x16c   : > { %v765_v45 = vadd.f32 %v764_v51, %v759_v30  ;;  %v607_v54 = vsel %vm606_vm5, %v605_v25, %v601_v7  ;;  %v845_v51 = vmul.f32 %v1739_v28, %v843_v11 }
 0x16d   : > { %v609_v12 = vsel %vm608_vm6, %v607_v54, 0.0  ;;  %v850_v7 = vpop.permute.xlu0 %849 }
 0x16e   : > { %v768_v53 = vpop.permute.xlu1 %767  ;;  %610 = vst [vmem:[%s1803_s30] sm:$0xf] %v609_v12 }
 0x16f   : > { %v770_v9 = vmul.f32 %v768_v53, %v1701_v18 }
 0x171   : > { %v771_v31 = vadd.f32 %v770_v9, %v765_v45 }
 0x173   : > { %v795_v41 = vpop.permute.xlu1 %794  ;;  %v777_v15 = vadd.f32 %v1725_v20, %v771_v31 }
 0x174   : > { %v797_v42 = vmul.f32 %v795_v41, %v1678_v1 }
 0x178   : > { %v801_v50 = vpop.permute.xlu1 %800 }
 0x179   : > { %v803_v36 = vmul.f32 %v801_v50, %v1680_v44 }
 0x17b   : > { %v804_v39 = vadd.f32 %v803_v36, %v797_v42 }
 0x17c   : > { %v864_v40 = vpop.permute.xlu1 %863 }
 0x17d   : > { %v866_v29 = vmul.f32 %v864_v40, %v1680_v44 }
 0x17f   : > { %v867_v52 = vadd.f32 %v866_v29, %v860_v61 }
 0x181   : > { %v807_v17 = vpop.permute.xlu1 %806  ;;  %v873_v26 = vadd.f32 %v872_v8, %v867_v52 }
 0x182   : > { %v809_v20 = vmul.f32 %v807_v17, %v1682_v47  ;;  %v890_v47 = vmul.f32 %v1930_v24, %v1714_v21 }
 0x184   : > { %v810_v22 = vadd.f32 %v809_v20, %v804_v39 }
 0x186   : > { %v813_v33 = vpop.permute.xlu1 %812 }
 0x187   : > { %v815_v35 = vmul.f32 %v813_v33, %v1688_v10 }
 0x189   : > { %v816_v34 = vadd.f32 %v815_v35, %v810_v22 }
 0x18a   : > { %v876_v48 = vpop.permute.xlu1 %875 }
 0x18b   : > { %v878_v1 = vmul.f32 %v876_v48, %v1688_v10  ;;  %v822_v44 = vadd.f32 %v821_v37, %v816_v34 }
 0x18d   : > { %v879_v5 = vadd.f32 %v878_v1, %v873_v26 }
 0x18f   : > { %v882_v4 = vpop.permute.xlu1 %881 }
 0x190   : > { %v884_v0 = vmul.f32 %v882_v4, %v1690_v27 }
 0x192   : > { %v885_v49 = vadd.f32 %v884_v0, %v879_v5 }
 0x194   : > { %v825_v2 = vpop.permute.xlu1 %824  ;;  %v891_v43 = vadd.f32 %v890_v47, %v885_v49 }
 0x195   : > { %v827_v57 = vmul.f32 %v825_v2, %v1714_v21 }
 0x197   : > { %v828_v6 = vadd.f32 %v827_v57, %v822_v44 }
 0x199   : > { %v831_v32 = vpop.permute.xlu1 %830 }
 0x19a   : > { %v833_v56 = vmul.f32 %v831_v32, %v1701_v18 }
 0x19c   : > { %v834_v38 = vadd.f32 %v833_v56, %v828_v6 }
 0x19d   : > { %v894_v59 = vpop.permute.xlu1 %893 }
 0x19e   : > { %v896_v10 = vmul.f32 %v894_v59, %v1701_v18  ;;  %v840_v3 = vadd.f32 %v1718_v46, %v834_v38 }
 0x1a0   : > { %v897_v27 = vadd.f32 %v896_v10, %v891_v43  ;;  %v846_v63 = vadd.f32 %v845_v51, %v840_v3 }
 0x1a2   : > { %v780_v58 = vpop.permute.xlu1 %779 }
 0x1a3   : > { %v782_v21 = vmul.f32 %v1739_v28, %v780_v58 }
 0x1a5   : > { %v783_v46 = vadd.f32 %v782_v21, %v777_v15 }
 0x1a7   : > { %v900_v23 = vpop.permute.xlu1 %899 }
 0x1a8   : > { %v902_v30 = vmul.f32 %v900_v23, %v1707_v62  ;;  %v852_v62 = vadd.f32 %v850_v7, %v846_v63 }
 0x1aa   : > { %v903_v60 = vadd.f32 %v902_v30, %v897_v27 }
 0x1ac   : > { %v906_v19 = vpop.permute.xlu1 %905 }
 0x1ad   : > { %v908_v18 = vmul.f32 %v1739_v28, %v906_v19 }
 0x1af   : > { %v909_v53 = vadd.f32 %v908_v18, %v903_v60 }
 0x1b1   : > { %v787_v25 = vpop.permute.xlu1 %786 }
 0x1b2   : > { %v789_v45 = vadd.f32 %v787_v25, %v783_v46 }
 0x1b4   : > { %v916_v54 = vsel %vm602_vm3, %v1772_v14, %v789_v45 }
 0x1b5   : > { %v913_v12 = vpop.permute.xlu1 %912  ;;  %v917_v9 = vsel %vm604_vm4, %v916_v54, %v852_v62 }
 0x1b6   : > { %v915_v28 = vadd.f32 %v913_v12, %v909_v53 }
 0x1b8   : > { %v918_v31 = vsel %vm606_vm5, %v917_v9, %v915_v28 }
 0x1b9   : > { %v919_v14 = vsel %vm608_vm6, %v918_v31, 0.0 }
 0x1ba   : > { %1069 = vst [vmem:[%s1803_s30 + $0x4] sm:$0xf] %v919_v14 }
 0x1bb   : > { %1216 = shalt.err (!%p1213_p8)
}
 0x1bc   : > { %s1217_s6 = scalar_lea.hbm %s1840_s9, 128  ;;  %s1221_s26 = scalar_lea.hbm %s1896_s3, 512 }
 0x1bd   : > { %p1218_p10 = scmp.ne.s32.totalorder %s1840_s9, %s1217_s6  ;;  %p1222_p13 = scmp.lt.u32.totalorder %s1840_s9, %s1896_s3 }
 0x1be   : > { %p1223_p0 = scmp.lt.u32.totalorder %s1221_s26, %s1217_s6  ;;  %p1225_p2 = scmp.lt.u32.totalorder %s1217_s6, %s1840_s9 }
 0x1bf   : > { %p1219_p11 = pnand %p1218_p10, %p1359_p5 }
 0x1c0   : > { %p1224_p1 = por %p1223_p0, %p1222_p13 }
 0x1c1   : > { %p1220_p12 = pneg %p1219_p11 }
 0x1c2   : > { %p1226_p3 = por %p1225_p2, %p1224_p1 }
 0x1c4   : > { %p1227_p4 = pnand %p1226_p3, %p1220_p12 }
 0x1c6   : > { %1230 = shalt.err (!%p1227_p4)
}
 0x1c7   : > { %s1297_s29 = smov 64   ;;  %s1298_s30 = smov 256  }
 0x1c8   : > { %s1299_s5 = smov 4  }
 0x1c9   : > { %1076 = dma.vmem_to_hbm [thread:$0]  (%p1359_p5), %s1835_s4, 128, %s1840_s9, %s1847_s15, %s1297_s29, %s1298_s30, %s1299_s5  }
 0x1ca PF: > { %p1082_p6 = scmp.ge.s32.totalorder %s1281_s17, 2  ;;  %s953_s7 = sand.u32 1, %s1261_s12  }
 0x1cb   : > { %s954_s8 = scalar_lea.sflag [#allocation6], %s953_s7 }
 0x1cc   : > { %p1079_p7 = pnand %p1082_p6, %p1370_p9 }
 0x1ce   : > { %1256 = dma.done.wait (!%p1079_p7), %s954_s8, 128  }
 0x1cf   : > { %1258 = vsyncadd (!%p1079_p7), %s954_s8, 4294967168  ;;  %s16_s17 = sadd.s32 1, %s1281_s17   ;;  %s1931_s12 = smov %s1265_s13 }
 0x1d0   : > { %p13_p8 = scmp.ge.s32.totalorder %s16_s17, 6   ;;  %s1932_s13 = smov %s1269_s14 }
 0x1d1   : > { %s1933_s14 = smov %s1368_s24  ;;  %s1934_s15 = smov %s1277_s16 }
 0x1d2   : > { %s1935_s16 = smov %s1937_s20  ;;  %15 = sbr.rel (!%p13_p8) target bundleno = 4 (0x4), region = 127 }
 0x1d9   :  { %959 = vsyncpa [#allocation6], 1 }
 0x1da   :  { %961 = vsyncpa [#allocation6 + $0x1], 1 }

</bundles_post_ra>
